<compile_context>
chip_gen: v7x
topology: tpu7x:2x2x1
jax: 0.10.0
libtpu: 0.0.40
codegen_flags: <defaults>
</compile_context>

<pallas_src>
import functools
import math

import jax
import jax.numpy as jnp
from jax.experimental import pallas as pl
from jax.experimental.pallas import tpu as pltpu


def _default_vmem_limit_bytes():
    # Raise the scoped-VMEM default (16/32 MiB depending on generation) while
    # staying well under v7x's 64 MiB physical VMEM.
    try:
        cap = pltpu.get_tpu_info().vmem_capacity_bytes
        return int(min(48 * 1024 * 1024, (3 * cap) // 4))
    except Exception:
        return 48 * 1024 * 1024


def encoder_layer_kernel(xq_ref, xf_ref,
                         wqkv_ref, bqkv_ref, wo_ref, bo_ref,
                         g1_ref, beta1_ref,
                         w1_ref, fb1_ref, w2_ref, fb2_ref,
                         g2_ref, beta2_ref,
                         o_ref, *, nhead):
    xq = xq_ref[0]                       # (TS, D) f32 — residual path stays f32
    TS, D = xq.shape
    S = xf_ref.shape[1]
    hd = D // nhead
    scale = 1.0 / math.sqrt(hd)

    xq_b = xq.astype(jnp.bfloat16)

    # ---- Fused QKV projection (bf16 operands, f32 accumulation) ----
    if TS == S:
        # One wide (S, 3D) matmul.
        qkv = (jnp.dot(xq_b, wqkv_ref[...], preferred_element_type=jnp.float32)
               + bqkv_ref[...])
        q = qkv[:, :D]
        k = qkv[:, D:2 * D]
        v = qkv[:, 2 * D:]
    else:
        # Q only for the query tile, K/V for the full sequence row-block.
        xf_b = xf_ref[0].astype(jnp.bfloat16)                     # (S, D)
        q = (jnp.dot(xq_b, wqkv_ref[:, :D], preferred_element_type=jnp.float32)
             + bqkv_ref[:, :D])
        kv = (jnp.dot(xf_b, wqkv_ref[:, D:], preferred_element_type=jnp.float32)
              + bqkv_ref[:, D:])
        k = kv[:, :D]
        v = kv[:, D:]

    # Fold 1/sqrt(hd) into q once ((TS*D) mults instead of nhead*TS*S).
    q = q * scale

    # ---- Batched-head attention (no per-head loop, no K transpose) ----
    def heads(t, n_rows):
        # (n_rows, D) -> (nhead, n_rows, hd) in bf16 via static lane slices.
        return jnp.concatenate(
            [t[None, :, h * hd:(h + 1) * hd] for h in range(nhead)], axis=0
        ).astype(jnp.bfloat16)

    qh = heads(q, TS)                    # (nhead, TS, hd)
    kh = heads(k, S)                     # (nhead, S,  hd)
    vh = heads(v, S)                     # (nhead, S,  hd)

    s = jnp.einsum('hqd,hkd->hqk', qh, kh,
                   preferred_element_type=jnp.float32)            # (nhead, TS, S)
    s = s - jnp.max(s, axis=-1, keepdims=True)
    p = jnp.exp(s)
    p = p * pl.reciprocal(jnp.sum(p, axis=-1, keepdims=True), approx=True)
    ctx = jnp.einsum('hqk,hkd->hqd', p.astype(jnp.bfloat16), vh,
                     preferred_element_type=jnp.float32)          # (nhead, TS, hd)
    ctx2d = jnp.concatenate([ctx[h] for h in range(nhead)], axis=-1)  # (TS, D)

    attn = (jnp.dot(ctx2d.astype(jnp.bfloat16), wo_ref[...],
                    preferred_element_type=jnp.float32) + bo_ref[...])

    # ---- residual + LayerNorm1 (f32) ----
    h1 = xq + attn
    mu1 = jnp.mean(h1, axis=-1, keepdims=True)
    var1 = jnp.mean((h1 - mu1) ** 2, axis=-1, keepdims=True)
    h1n = (h1 - mu1) * jax.lax.rsqrt(var1 + 1e-5) * g1_ref[...] + beta1_ref[...]

    # ---- Position-wise feed-forward (bf16 matmuls, f32 accumulate) ----
    f = (jnp.dot(h1n.astype(jnp.bfloat16), w1_ref[...],
                 preferred_element_type=jnp.float32) + fb1_ref[...])
    f = jnp.maximum(f, 0.0)
    f = (jnp.dot(f.astype(jnp.bfloat16), w2_ref[...],
                 preferred_element_type=jnp.float32) + fb2_ref[...])

    # ---- residual + LayerNorm2 (f32) ----
    h2 = h1n + f
    mu2 = jnp.mean(h2, axis=-1, keepdims=True)
    var2 = jnp.mean((h2 - mu2) ** 2, axis=-1, keepdims=True)
    out = (h2 - mu2) * jax.lax.rsqrt(var2 + 1e-5) * g2_ref[...] + beta2_ref[...]

    o_ref[0] = out.astype(o_ref.dtype)


def encoder_layer(x, params, nhead, *, seq_tile=None, vmem_limit_bytes=None):
    """x: (B, S, D) float32. params: dict of f32 weights (see init_params)."""
    B, S, D = x.shape
    assert D % nhead == 0
    TS = S if seq_tile is None else int(seq_tile)
    assert S % TS == 0, "seq_tile must divide S"

    # Pack + cast weights once, outside the kernel.
    wqkv = jnp.concatenate([params["wq"], params["wk"], params["wv"]],
                           axis=1).astype(jnp.bfloat16)            # (D, 3D)
    bqkv = jnp.concatenate([params["bq"], params["bk"], params["bv"]], axis=1)
    plist = [
        wqkv, bqkv,
        params["wo"].astype(jnp.bfloat16), params["bo"],
        params["ln1_g"], params["ln1_b"],
        params["w1"].astype(jnp.bfloat16), params["b1"],
        params["w2"].astype(jnp.bfloat16), params["b2"],
        params["ln2_g"], params["ln2_b"],
    ]

    def const_spec(shape):
        n = len(shape)
        return pl.BlockSpec(shape, lambda b, s, _n=n: (0,) * _n)

    in_specs = ([pl.BlockSpec((1, TS, D), lambda b, s: (b, s, 0)),   # query tile
                 pl.BlockSpec((1, S, D), lambda b, s: (b, 0, 0))] +  # full row (K/V)
                [const_spec(p.shape) for p in plist])
    out_spec = pl.BlockSpec((1, TS, D), lambda b, s: (b, s, 0))

    if vmem_limit_bytes is None:
        vmem_limit_bytes = _default_vmem_limit_bytes()

    kernel = functools.partial(encoder_layer_kernel, nhead=nhead)
    return pl.pallas_call(
        kernel,
        out_shape=jax.ShapeDtypeStruct((B, S, D), x.dtype),
        grid_spec=pltpu.PrefetchScalarGridSpec(
            num_scalar_prefetch=0,
            grid=(B, S // TS),
            in_specs=in_specs,
            out_specs=out_spec,
        ),
        compiler_params=pltpu.CompilerParams(
            dimension_semantics=("parallel", "parallel"),
            vmem_limit_bytes=int(vmem_limit_bytes)),
    )(x, x, *plist)


def init_params(key, d_model, nhead, dim_feedforward):
    """Deterministic synthetic parameters. Linear weights stored as (in, out), f32."""
    ks = jax.random.split(key, 12)

    def lin(k, din, dout):
        return jax.random.normal(k, (din, dout), jnp.float32) * (1.0 / math.sqrt(din))

    def bias(k, d):
        return 0.01 * jax.random.normal(k, (1, d), jnp.float32)

    return {
        "wq": lin(ks[0], d_model, d_model), "bq": bias(ks[1], d_model),
        "wk": lin(ks[2], d_model, d_model), "bk": bias(ks[3], d_model),
        "wv": lin(ks[4], d_model, d_model), "bv": bias(ks[5], d_model),
        "wo": lin(ks[6], d_model, d_model), "bo": bias(ks[7], d_model),
        "ln1_g": jnp.ones((1, d_model), jnp.float32),
        "ln1_b": jnp.zeros((1, d_model), jnp.float32),
        "w1": lin(ks[8], d_model, dim_feedforward), "b1": bias(ks[9], dim_feedforward),
        "w2": lin(ks[10], dim_feedforward, d_model), "b2": bias(ks[11], d_model),
        "ln2_g": jnp.ones((1, d_model), jnp.float32),
        "ln2_b": jnp.zeros((1, d_model), jnp.float32),
    }


def encoder_layer_ref(x, p, nhead):
    """Pure-JAX f32 reference (PyTorch semantics, eval-mode dropout)."""
    B, S, D = x.shape
    hd = D // nhead
    q = x @ p["wq"] + p["bq"]
    k = x @ p["wk"] + p["bk"]
    v = x @ p["wv"] + p["bv"]
    qh = q.reshape(B, S, nhead, hd).transpose(0, 2, 1, 3)
    kh = k.reshape(B, S, nhead, hd).transpose(0, 2, 1, 3)
    vh = v.reshape(B, S, nhead, hd).transpose(0, 2, 1, 3)
    s = jnp.einsum("bhqd,bhkd->bhqk", qh, kh) / math.sqrt(hd)
    a = jax.nn.softmax(s, axis=-1)
    ctx = jnp.einsum("bhqk,bhkd->bhqd", a, vh).transpose(0, 2, 1, 3).reshape(B, S, D)
    attn = ctx @ p["wo"] + p["bo"]

    def ln(h, g, b):
        mu = jnp.mean(h, -1, keepdims=True)
        var = jnp.mean((h - mu) ** 2, -1, keepdims=True)
        return (h - mu) * jax.lax.rsqrt(var + 1e-5) * g + b

    h1 = ln(x + attn, p["ln1_g"], p["ln1_b"])
    f = jnp.maximum(h1 @ p["w1"] + p["b1"], 0.0) @ p["w2"] + p["b2"]
    return ln(h1 + f, p["ln2_g"], p["ln2_b"])


if __name__ == "__main__":
    # Small but lane-dense shapes: D and FF are multiples of 128.
    B, S, D, NHEAD, FF = 2, 16, 128, 4, 256
    key = jax.random.PRNGKey(0)
    kx, kp = jax.random.split(key)
    x = jax.random.normal(kx, (B, S, D), jnp.float32)
    params = init_params(kp, D, NHEAD, FF)

    ref = encoder_layer_ref(x, params, NHEAD)

    # Path 1: whole sequence in one tile (single fused QKV matmul).
    out_full = jax.block_until_ready(encoder_layer(x, params, NHEAD))
    # Path 2: seq-tiled grid (query tiles of 8 rows, full row-block for K/V).
    out_tiled = jax.block_until_ready(encoder_layer(x, params, NHEAD, seq_tile=8))

    for out in (out_full, out_tiled):
        assert out.shape == (B, S, D)
        # bf16 matmul operands + approx reciprocal vs f32 reference.
        assert jnp.allclose(out, ref, rtol=5e-2, atol=5e-2), \
            float(jnp.max(jnp.abs(out - ref)))
    print("KERNEL_OK")
</pallas_src>

<mosaic_0001>
module attributes {stable_mosaic.version = 11 : i64} {
  func.func @encoder_layer_kernel(%arg0: i32, %arg1: i32, %arg2: memref<1x16x128xf32, #tpu.memory_space<vmem>>, %arg3: memref<1x16x128xf32, #tpu.memory_space<vmem>>, %arg4: memref<128x384xbf16, #tpu.memory_space<vmem>>, %arg5: memref<1x384xf32, #tpu.memory_space<vmem>>, %arg6: memref<128x128xbf16, #tpu.memory_space<vmem>>, %arg7: memref<1x128xf32, #tpu.memory_space<vmem>>, %arg8: memref<1x128xf32, #tpu.memory_space<vmem>>, %arg9: memref<1x128xf32, #tpu.memory_space<vmem>>, %arg10: memref<128x256xbf16, #tpu.memory_space<vmem>>, %arg11: memref<1x256xf32, #tpu.memory_space<vmem>>, %arg12: memref<256x128xbf16, #tpu.memory_space<vmem>>, %arg13: memref<1x128xf32, #tpu.memory_space<vmem>>, %arg14: memref<1x128xf32, #tpu.memory_space<vmem>>, %arg15: memref<1x128xf32, #tpu.memory_space<vmem>>, %arg16: memref<1x16x128xf32, #tpu.memory_space<vmem>>) attributes {dimension_semantics = [#tpu.dimension_semantics<parallel>, #tpu.dimension_semantics<parallel>], iteration_bounds = array<i64: 2, 1>, scalar_prefetch = 0 : i64, scratch_operands = 0 : i64, tpu.core_type = #tpu.core_type<tc>, window_params = [{transform_indices = @transform_0, window_bounds = array<i64: 1, 16, 128>}, {transform_indices = @transform_1, window_bounds = array<i64: 1, 16, 128>}, {pipeline_mode = #tpu.pipeline_mode<synchronous>, transform_indices = @transform_2, window_bounds = array<i64: 128, 384>}, {pipeline_mode = #tpu.pipeline_mode<synchronous>, transform_indices = @transform_3, window_bounds = array<i64: 1, 384>}, {pipeline_mode = #tpu.pipeline_mode<synchronous>, transform_indices = @transform_4, window_bounds = array<i64: 128, 128>}, {pipeline_mode = #tpu.pipeline_mode<synchronous>, transform_indices = @transform_5, window_bounds = array<i64: 1, 128>}, {pipeline_mode = #tpu.pipeline_mode<synchronous>, transform_indices = @transform_6, window_bounds = array<i64: 1, 128>}, {pipeline_mode = #tpu.pipeline_mode<synchronous>, transform_indices = @transform_7, window_bounds = array<i64: 1, 128>}, {pipeline_mode = #tpu.pipeline_mode<synchronous>, transform_indices = @transform_8, window_bounds = array<i64: 128, 256>}, {pipeline_mode = #tpu.pipeline_mode<synchronous>, transform_indices = @transform_9, window_bounds = array<i64: 1, 256>}, {pipeline_mode = #tpu.pipeline_mode<synchronous>, transform_indices = @transform_10, window_bounds = array<i64: 256, 128>}, {pipeline_mode = #tpu.pipeline_mode<synchronous>, transform_indices = @transform_11, window_bounds = array<i64: 1, 128>}, {pipeline_mode = #tpu.pipeline_mode<synchronous>, transform_indices = @transform_12, window_bounds = array<i64: 1, 128>}, {pipeline_mode = #tpu.pipeline_mode<synchronous>, transform_indices = @transform_13, window_bounds = array<i64: 1, 128>}, {transform_indices = @transform_14, window_bounds = array<i64: 1, 16, 128>}]} {
    %c0 = arith.constant 0 : index
    %c0_0 = arith.constant 0 : index
    %c0_1 = arith.constant 0 : index
    %0 = vector.load %arg2[%c0, %c0_0, %c0_1] : memref<1x16x128xf32, #tpu.memory_space<vmem>>, vector<1x16x128xf32>
    %1 = vector.shape_cast %0 : vector<1x16x128xf32> to vector<16x128xf32>
    %2 = arith.truncf %1 : vector<16x128xf32> to vector<16x128xbf16>
    %c0_2 = arith.constant 0 : index
    %c0_3 = arith.constant 0 : index
    %3 = vector.load %arg4[%c0_2, %c0_3] : memref<128x384xbf16, #tpu.memory_space<vmem>>, vector<128x384xbf16>
    %cst = arith.constant dense<0.000000e+00> : vector<16x384xf32>
    %4 = tpu.matmul %2, %3, %cst {dimension_numbers = #tpu.dot_dimension_numbers<[1], [0], [0], [1], [0, 0, 1, 1], [], []>} : vector<16x128xbf16>, vector<128x384xbf16>, vector<16x384xf32> -> vector<16x384xf32>
    %c0_4 = arith.constant 0 : index
    %c0_5 = arith.constant 0 : index
    %5 = vector.load %arg5[%c0_4, %c0_5] : memref<1x384xf32, #tpu.memory_space<vmem>>, vector<1x384xf32>
    %6 = vector.broadcast %5 : vector<1x384xf32> to vector<16x384xf32>
    %7 = arith.addf %4, %6 : vector<16x384xf32>
    %8 = vector.extract_strided_slice %7 {offsets = [0, 0], sizes = [16, 128], strides = [1, 1]} : vector<16x384xf32> to vector<16x128xf32>
    %9 = vector.extract_strided_slice %7 {offsets = [0, 128], sizes = [16, 128], strides = [1, 1]} : vector<16x384xf32> to vector<16x128xf32>
    %10 = vector.extract_strided_slice %7 {offsets = [0, 256], sizes = [16, 128], strides = [1, 1]} : vector<16x384xf32> to vector<16x128xf32>
    %cst_6 = arith.constant 0.176776692 : f32
    %11 = vector.broadcast %cst_6 : f32 to vector<16x128xf32>
    %12 = arith.mulf %8, %11 : vector<16x128xf32>
    %13 = vector.extract_strided_slice %12 {offsets = [0, 0], sizes = [16, 32], strides = [1, 1]} : vector<16x128xf32> to vector<16x32xf32>
    %14 = vector.shape_cast %13 : vector<16x32xf32> to vector<1x16x32xf32>
    %15 = vector.extract_strided_slice %12 {offsets = [0, 32], sizes = [16, 32], strides = [1, 1]} : vector<16x128xf32> to vector<16x32xf32>
    %16 = vector.shape_cast %15 : vector<16x32xf32> to vector<1x16x32xf32>
    %17 = vector.extract_strided_slice %12 {offsets = [0, 64], sizes = [16, 32], strides = [1, 1]} : vector<16x128xf32> to vector<16x32xf32>
    %18 = vector.shape_cast %17 : vector<16x32xf32> to vector<1x16x32xf32>
    %19 = vector.extract_strided_slice %12 {offsets = [0, 96], sizes = [16, 32], strides = [1, 1]} : vector<16x128xf32> to vector<16x32xf32>
    %20 = vector.shape_cast %19 : vector<16x32xf32> to vector<1x16x32xf32>
    %21 = tpu.concatenate %14, %16, %18, %20 in 0 : vector<1x16x32xf32>, vector<1x16x32xf32>, vector<1x16x32xf32>, vector<1x16x32xf32> -> vector<4x16x32xf32>
    %22 = arith.truncf %21 : vector<4x16x32xf32> to vector<4x16x32xbf16>
    %23 = vector.extract_strided_slice %9 {offsets = [0, 0], sizes = [16, 32], strides = [1, 1]} : vector<16x128xf32> to vector<16x32xf32>
    %24 = vector.shape_cast %23 : vector<16x32xf32> to vector<1x16x32xf32>
    %25 = vector.extract_strided_slice %9 {offsets = [0, 32], sizes = [16, 32], strides = [1, 1]} : vector<16x128xf32> to vector<16x32xf32>
    %26 = vector.shape_cast %25 : vector<16x32xf32> to vector<1x16x32xf32>
    %27 = vector.extract_strided_slice %9 {offsets = [0, 64], sizes = [16, 32], strides = [1, 1]} : vector<16x128xf32> to vector<16x32xf32>
    %28 = vector.shape_cast %27 : vector<16x32xf32> to vector<1x16x32xf32>
    %29 = vector.extract_strided_slice %9 {offsets = [0, 96], sizes = [16, 32], strides = [1, 1]} : vector<16x128xf32> to vector<16x32xf32>
    %30 = vector.shape_cast %29 : vector<16x32xf32> to vector<1x16x32xf32>
    %31 = tpu.concatenate %24, %26, %28, %30 in 0 : vector<1x16x32xf32>, vector<1x16x32xf32>, vector<1x16x32xf32>, vector<1x16x32xf32> -> vector<4x16x32xf32>
    %32 = arith.truncf %31 : vector<4x16x32xf32> to vector<4x16x32xbf16>
    %33 = vector.extract_strided_slice %10 {offsets = [0, 0], sizes = [16, 32], strides = [1, 1]} : vector<16x128xf32> to vector<16x32xf32>
    %34 = vector.shape_cast %33 : vector<16x32xf32> to vector<1x16x32xf32>
    %35 = vector.extract_strided_slice %10 {offsets = [0, 32], sizes = [16, 32], strides = [1, 1]} : vector<16x128xf32> to vector<16x32xf32>
    %36 = vector.shape_cast %35 : vector<16x32xf32> to vector<1x16x32xf32>
    %37 = vector.extract_strided_slice %10 {offsets = [0, 64], sizes = [16, 32], strides = [1, 1]} : vector<16x128xf32> to vector<16x32xf32>
    %38 = vector.shape_cast %37 : vector<16x32xf32> to vector<1x16x32xf32>
    %39 = vector.extract_strided_slice %10 {offsets = [0, 96], sizes = [16, 32], strides = [1, 1]} : vector<16x128xf32> to vector<16x32xf32>
    %40 = vector.shape_cast %39 : vector<16x32xf32> to vector<1x16x32xf32>
    %41 = tpu.concatenate %34, %36, %38, %40 in 0 : vector<1x16x32xf32>, vector<1x16x32xf32>, vector<1x16x32xf32>, vector<1x16x32xf32> -> vector<4x16x32xf32>
    %42 = arith.truncf %41 : vector<4x16x32xf32> to vector<4x16x32xbf16>
    "tpu.trace_start"() <{level = 10 : i32, message = "hqd,hkd->hqk"}> : () -> ()
    %cst_7 = arith.constant dense<0.000000e+00> : vector<4x16x16xf32>
    %43 = tpu.matmul %22, %32, %cst_7 {dimension_numbers = #tpu.dot_dimension_numbers<[2], [2], [1], [1], [0, 0, 0, 1, 1, 1], [0], [0]>} : vector<4x16x32xbf16>, vector<4x16x32xbf16>, vector<4x16x16xf32> -> vector<4x16x16xf32>
    "tpu.trace_stop"() : () -> ()
    %cst_8 = arith.constant dense<0xFF800000> : vector<4x16xf32>
    %44 = vector.multi_reduction <maximumf>, %43, %cst_8 [2] : vector<4x16x16xf32> to vector<4x16xf32>
    %45 = vector.shape_cast %44 : vector<4x16xf32> to vector<4x16x1xf32>
    %46 = vector.broadcast %45 : vector<4x16x1xf32> to vector<4x16x16xf32>
    %47 = arith.subf %43, %46 : vector<4x16x16xf32>
    %48 = math.exp %47 : vector<4x16x16xf32>
    %cst_9 = arith.constant dense<0.000000e+00> : vector<4x16xf32>
    %49 = vector.multi_reduction <add>, %48, %cst_9 [2] : vector<4x16x16xf32> to vector<4x16xf32>
    %50 = vector.shape_cast %49 : vector<4x16xf32> to vector<4x16x1xf32>
    %51 = tpu.reciprocal %50 {approx = true} : vector<4x16x1xf32> -> vector<4x16x1xf32>
    %52 = vector.broadcast %51 : vector<4x16x1xf32> to vector<4x16x16xf32>
    %53 = arith.mulf %48, %52 : vector<4x16x16xf32>
    %54 = arith.truncf %53 : vector<4x16x16xf32> to vector<4x16x16xbf16>
    "tpu.trace_start"() <{level = 10 : i32, message = "hqk,hkd->hqd"}> : () -> ()
    %cst_10 = arith.constant dense<0.000000e+00> : vector<4x16x32xf32>
    %55 = tpu.matmul %54, %42, %cst_10 {dimension_numbers = #tpu.dot_dimension_numbers<[2], [1], [1], [2], [0, 0, 0, 1, 1, 2], [0], [0]>} : vector<4x16x16xbf16>, vector<4x16x32xbf16>, vector<4x16x32xf32> -> vector<4x16x32xf32>
    "tpu.trace_stop"() : () -> ()
    %56 = vector.extract_strided_slice %55 {offsets = [0, 0, 0], sizes = [1, 16, 32], strides = [1, 1, 1]} : vector<4x16x32xf32> to vector<1x16x32xf32>
    %57 = vector.shape_cast %56 : vector<1x16x32xf32> to vector<16x32xf32>
    %58 = vector.extract_strided_slice %55 {offsets = [1, 0, 0], sizes = [1, 16, 32], strides = [1, 1, 1]} : vector<4x16x32xf32> to vector<1x16x32xf32>
    %59 = vector.shape_cast %58 : vector<1x16x32xf32> to vector<16x32xf32>
    %60 = vector.extract_strided_slice %55 {offsets = [2, 0, 0], sizes = [1, 16, 32], strides = [1, 1, 1]} : vector<4x16x32xf32> to vector<1x16x32xf32>
    %61 = vector.shape_cast %60 : vector<1x16x32xf32> to vector<16x32xf32>
    %62 = vector.extract_strided_slice %55 {offsets = [3, 0, 0], sizes = [1, 16, 32], strides = [1, 1, 1]} : vector<4x16x32xf32> to vector<1x16x32xf32>
    %63 = vector.shape_cast %62 : vector<1x16x32xf32> to vector<16x32xf32>
    %64 = tpu.concatenate %57, %59, %61, %63 in 1 : vector<16x32xf32>, vector<16x32xf32>, vector<16x32xf32>, vector<16x32xf32> -> vector<16x128xf32>
    %65 = arith.truncf %64 : vector<16x128xf32> to vector<16x128xbf16>
    %c0_11 = arith.constant 0 : index
    %c0_12 = arith.constant 0 : index
    %66 = vector.load %arg6[%c0_11, %c0_12] : memref<128x128xbf16, #tpu.memory_space<vmem>>, vector<128x128xbf16>
    %cst_13 = arith.constant dense<0.000000e+00> : vector<16x128xf32>
    %67 = tpu.matmul %65, %66, %cst_13 {dimension_numbers = #tpu.dot_dimension_numbers<[1], [0], [0], [1], [0, 0, 1, 1], [], []>} : vector<16x128xbf16>, vector<128x128xbf16>, vector<16x128xf32> -> vector<16x128xf32>
    %c0_14 = arith.constant 0 : index
    %c0_15 = arith.constant 0 : index
    %68 = vector.load %arg7[%c0_14, %c0_15] : memref<1x128xf32, #tpu.memory_space<vmem>>, vector<1x128xf32>
    %69 = vector.broadcast %68 : vector<1x128xf32> to vector<16x128xf32>
    %70 = arith.addf %67, %69 : vector<16x128xf32>
    %71 = arith.addf %1, %70 : vector<16x128xf32>
    %cst_16 = arith.constant dense<0.000000e+00> : vector<16xf32>
    %72 = vector.multi_reduction <add>, %71, %cst_16 [1] : vector<16x128xf32> to vector<16xf32>
    %73 = vector.shape_cast %72 : vector<16xf32> to vector<16x1xf32>
    %cst_17 = arith.constant 1.280000e+02 : f32
    %74 = vector.broadcast %cst_17 : f32 to vector<16x1xf32>
    %75 = arith.divf %73, %74 : vector<16x1xf32>
    %76 = vector.broadcast %75 : vector<16x1xf32> to vector<16x128xf32>
    %77 = arith.subf %71, %76 : vector<16x128xf32>
    %78 = arith.mulf %77, %77 : vector<16x128xf32>
    %cst_18 = arith.constant dense<0.000000e+00> : vector<16xf32>
    %79 = vector.multi_reduction <add>, %78, %cst_18 [1] : vector<16x128xf32> to vector<16xf32>
    %80 = vector.shape_cast %79 : vector<16xf32> to vector<16x1xf32>
    %cst_19 = arith.constant 1.280000e+02 : f32
    %81 = vector.broadcast %cst_19 : f32 to vector<16x1xf32>
    %82 = arith.divf %80, %81 : vector<16x1xf32>
    %83 = vector.broadcast %75 : vector<16x1xf32> to vector<16x128xf32>
    %84 = arith.subf %71, %83 : vector<16x128xf32>
    %cst_20 = arith.constant 9.99999974E-6 : f32
    %85 = vector.broadcast %cst_20 : f32 to vector<16x1xf32>
    %86 = arith.addf %82, %85 : vector<16x1xf32>
    %87 = math.rsqrt %86 : vector<16x1xf32>
    %88 = vector.broadcast %87 : vector<16x1xf32> to vector<16x128xf32>
    %89 = arith.mulf %84, %88 : vector<16x128xf32>
    %c0_21 = arith.constant 0 : index
    %c0_22 = arith.constant 0 : index
    %90 = vector.load %arg8[%c0_21, %c0_22] : memref<1x128xf32, #tpu.memory_space<vmem>>, vector<1x128xf32>
    %91 = vector.broadcast %90 : vector<1x128xf32> to vector<16x128xf32>
    %92 = arith.mulf %89, %91 : vector<16x128xf32>
    %c0_23 = arith.constant 0 : index
    %c0_24 = arith.constant 0 : index
    %93 = vector.load %arg9[%c0_23, %c0_24] : memref<1x128xf32, #tpu.memory_space<vmem>>, vector<1x128xf32>
    %94 = vector.broadcast %93 : vector<1x128xf32> to vector<16x128xf32>
    %95 = arith.addf %92, %94 : vector<16x128xf32>
    %96 = arith.truncf %95 : vector<16x128xf32> to vector<16x128xbf16>
    %c0_25 = arith.constant 0 : index
    %c0_26 = arith.constant 0 : index
    %97 = vector.load %arg10[%c0_25, %c0_26] : memref<128x256xbf16, #tpu.memory_space<vmem>>, vector<128x256xbf16>
    %cst_27 = arith.constant dense<0.000000e+00> : vector<16x256xf32>
    %98 = tpu.matmul %96, %97, %cst_27 {dimension_numbers = #tpu.dot_dimension_numbers<[1], [0], [0], [1], [0, 0, 1, 1], [], []>} : vector<16x128xbf16>, vector<128x256xbf16>, vector<16x256xf32> -> vector<16x256xf32>
    %c0_28 = arith.constant 0 : index
    %c0_29 = arith.constant 0 : index
    %99 = vector.load %arg11[%c0_28, %c0_29] : memref<1x256xf32, #tpu.memory_space<vmem>>, vector<1x256xf32>
    %100 = vector.broadcast %99 : vector<1x256xf32> to vector<16x256xf32>
    %101 = arith.addf %98, %100 : vector<16x256xf32>
    %cst_30 = arith.constant 0.000000e+00 : f32
    %102 = vector.broadcast %cst_30 : f32 to vector<16x256xf32>
    %103 = arith.maximumf %101, %102 : vector<16x256xf32>
    %104 = arith.truncf %103 : vector<16x256xf32> to vector<16x256xbf16>
    %c0_31 = arith.constant 0 : index
    %c0_32 = arith.constant 0 : index
    %105 = vector.load %arg12[%c0_31, %c0_32] : memref<256x128xbf16, #tpu.memory_space<vmem>>, vector<256x128xbf16>
    %cst_33 = arith.constant dense<0.000000e+00> : vector<16x128xf32>
    %106 = tpu.matmul %104, %105, %cst_33 {dimension_numbers = #tpu.dot_dimension_numbers<[1], [0], [0], [1], [0, 0, 1, 1], [], []>} : vector<16x256xbf16>, vector<256x128xbf16>, vector<16x128xf32> -> vector<16x128xf32>
    %c0_34 = arith.constant 0 : index
    %c0_35 = arith.constant 0 : index
    %107 = vector.load %arg13[%c0_34, %c0_35] : memref<1x128xf32, #tpu.memory_space<vmem>>, vector<1x128xf32>
    %108 = vector.broadcast %107 : vector<1x128xf32> to vector<16x128xf32>
    %109 = arith.addf %106, %108 : vector<16x128xf32>
    %110 = arith.addf %95, %109 : vector<16x128xf32>
    %cst_36 = arith.constant dense<0.000000e+00> : vector<16xf32>
    %111 = vector.multi_reduction <add>, %110, %cst_36 [1] : vector<16x128xf32> to vector<16xf32>
    %112 = vector.shape_cast %111 : vector<16xf32> to vector<16x1xf32>
    %cst_37 = arith.constant 1.280000e+02 : f32
    %113 = vector.broadcast %cst_37 : f32 to vector<16x1xf32>
    %114 = arith.divf %112, %113 : vector<16x1xf32>
    %115 = vector.broadcast %114 : vector<16x1xf32> to vector<16x128xf32>
    %116 = arith.subf %110, %115 : vector<16x128xf32>
    %117 = arith.mulf %116, %116 : vector<16x128xf32>
    %cst_38 = arith.constant dense<0.000000e+00> : vector<16xf32>
    %118 = vector.multi_reduction <add>, %117, %cst_38 [1] : vector<16x128xf32> to vector<16xf32>
    %119 = vector.shape_cast %118 : vector<16xf32> to vector<16x1xf32>
    %cst_39 = arith.constant 1.280000e+02 : f32
    %120 = vector.broadcast %cst_39 : f32 to vector<16x1xf32>
    %121 = arith.divf %119, %120 : vector<16x1xf32>
    %122 = vector.broadcast %114 : vector<16x1xf32> to vector<16x128xf32>
    %123 = arith.subf %110, %122 : vector<16x128xf32>
    %cst_40 = arith.constant 9.99999974E-6 : f32
    %124 = vector.broadcast %cst_40 : f32 to vector<16x1xf32>
    %125 = arith.addf %121, %124 : vector<16x1xf32>
    %126 = math.rsqrt %125 : vector<16x1xf32>
    %127 = vector.broadcast %126 : vector<16x1xf32> to vector<16x128xf32>
    %128 = arith.mulf %123, %127 : vector<16x128xf32>
    %c0_41 = arith.constant 0 : index
    %c0_42 = arith.constant 0 : index
    %129 = vector.load %arg14[%c0_41, %c0_42] : memref<1x128xf32, #tpu.memory_space<vmem>>, vector<1x128xf32>
    %130 = vector.broadcast %129 : vector<1x128xf32> to vector<16x128xf32>
    %131 = arith.mulf %128, %130 : vector<16x128xf32>
    %c0_43 = arith.constant 0 : index
    %c0_44 = arith.constant 0 : index
    %132 = vector.load %arg15[%c0_43, %c0_44] : memref<1x128xf32, #tpu.memory_space<vmem>>, vector<1x128xf32>
    %133 = vector.broadcast %132 : vector<1x128xf32> to vector<16x128xf32>
    %134 = arith.addf %131, %133 : vector<16x128xf32>
    %c0_45 = arith.constant 0 : index
    %c0_46 = arith.constant 0 : index
    %c0_47 = arith.constant 0 : index
    %135 = vector.load %arg16[%c0_45, %c0_46, %c0_47] : memref<1x16x128xf32, #tpu.memory_space<vmem>>, vector<1x16x128xf32>
    %136 = vector.shape_cast %135 : vector<1x16x128xf32> to vector<16x128xf32>
    %137 = vector.shape_cast %134 : vector<16x128xf32> to vector<1x16x128xf32>
    tpu.vector_store %arg16[%c0_45, %c0_46, %c0_47], %137 {strides = array<i32>} : memref<1x16x128xf32, #tpu.memory_space<vmem>>, vector<1x16x128xf32>,
    return
  }
  func.func @transform_0(%arg0: i32, %arg1: i32) -> (i32, i32, i32) {
    %c0_i32 = arith.constant 0 : i32
    %c0_i32_0 = arith.constant 0 : i32
    return %arg0, %arg1, %c0_i32 : i32, i32, i32
  }
  func.func @transform_1(%arg0: i32, %arg1: i32) -> (i32, i32, i32) {
    %c0_i32 = arith.constant 0 : i32
    %c0_i32_0 = arith.constant 0 : i32
    %c0_i32_1 = arith.constant 0 : i32
    return %arg0, %c0_i32, %c0_i32_0 : i32, i32, i32
  }
  func.func @transform_2(%arg0: i32, %arg1: i32) -> (i32, i32) {
    %c0_i32 = arith.constant 0 : i32
    %c0_i32_0 = arith.constant 0 : i32
    %c0_i32_1 = arith.constant 0 : i32
    return %c0_i32, %c0_i32_0 : i32, i32
  }
  func.func @transform_3(%arg0: i32, %arg1: i32) -> (i32, i32) {
    %c0_i32 = arith.constant 0 : i32
    %c0_i32_0 = arith.constant 0 : i32
    %c0_i32_1 = arith.constant 0 : i32
    return %c0_i32, %c0_i32_0 : i32, i32
  }
  func.func @transform_4(%arg0: i32, %arg1: i32) -> (i32, i32) {
    %c0_i32 = arith.constant 0 : i32
    %c0_i32_0 = arith.constant 0 : i32
    %c0_i32_1 = arith.constant 0 : i32
    return %c0_i32, %c0_i32_0 : i32, i32
  }
  func.func @transform_5(%arg0: i32, %arg1: i32) -> (i32, i32) {
    %c0_i32 = arith.constant 0 : i32
    %c0_i32_0 = arith.constant 0 : i32
    %c0_i32_1 = arith.constant 0 : i32
    return %c0_i32, %c0_i32_0 : i32, i32
  }
  func.func @transform_6(%arg0: i32, %arg1: i32) -> (i32, i32) {
    %c0_i32 = arith.constant 0 : i32
    %c0_i32_0 = arith.constant 0 : i32
    %c0_i32_1 = arith.constant 0 : i32
    return %c0_i32, %c0_i32_0 : i32, i32
  }
  func.func @transform_7(%arg0: i32, %arg1: i32) -> (i32, i32) {
    %c0_i32 = arith.constant 0 : i32
    %c0_i32_0 = arith.constant 0 : i32
    %c0_i32_1 = arith.constant 0 : i32
    return %c0_i32, %c0_i32_0 : i32, i32
  }
  func.func @transform_8(%arg0: i32, %arg1: i32) -> (i32, i32) {
    %c0_i32 = arith.constant 0 : i32
    %c0_i32_0 = arith.constant 0 : i32
    %c0_i32_1 = arith.constant 0 : i32
    return %c0_i32, %c0_i32_0 : i32, i32
  }
  func.func @transform_9(%arg0: i32, %arg1: i32) -> (i32, i32) {
    %c0_i32 = arith.constant 0 : i32
    %c0_i32_0 = arith.constant 0 : i32
    %c0_i32_1 = arith.constant 0 : i32
    return %c0_i32, %c0_i32_0 : i32, i32
  }
  func.func @transform_10(%arg0: i32, %arg1: i32) -> (i32, i32) {
    %c0_i32 = arith.constant 0 : i32
    %c0_i32_0 = arith.constant 0 : i32
    %c0_i32_1 = arith.constant 0 : i32
    return %c0_i32, %c0_i32_0 : i32, i32
  }
  func.func @transform_11(%arg0: i32, %arg1: i32) -> (i32, i32) {
    %c0_i32 = arith.constant 0 : i32
    %c0_i32_0 = arith.constant 0 : i32
    %c0_i32_1 = arith.constant 0 : i32
    return %c0_i32, %c0_i32_0 : i32, i32
  }
  func.func @transform_12(%arg0: i32, %arg1: i32) -> (i32, i32) {
    %c0_i32 = arith.constant 0 : i32
    %c0_i32_0 = arith.constant 0 : i32
    %c0_i32_1 = arith.constant 0 : i32
    return %c0_i32, %c0_i32_0 : i32, i32
  }
  func.func @transform_13(%arg0: i32, %arg1: i32) -> (i32, i32) {
    %c0_i32 = arith.constant 0 : i32
    %c0_i32_0 = arith.constant 0 : i32
    %c0_i32_1 = arith.constant 0 : i32
    return %c0_i32, %c0_i32_0 : i32, i32
  }
  func.func @transform_14(%arg0: i32, %arg1: i32) -> (i32, i32, i32) {
    %c0_i32 = arith.constant 0 : i32
    %c0_i32_0 = arith.constant 0 : i32
    return %arg0, %arg1, %c0_i32 : i32, i32, i32
  }
}

</mosaic_0001>

<bundles_post_ra>
// kernel: tpu_custom_call.1
= control target key start
LH: loop header
LB: loop body
LE: loop exit
PB: predicated region body
PF: predicated region fallthrough
CT: control target
= control target key end

     0   :  { %s3563_s0 = inlined_call_operand.hbm [shape: f32[2,16,128], index: 0, kind: input, shape index: {}]   ;;  %s3564_s1 = inlined_call_operand.hbm [shape: f32[2,16,128], index: 1, kind: input, shape index: {}]   ;;  %s3565_s2 = inlined_call_operand.hbm [shape: bf16[128,384], index: 2, kind: input, shape index: {}]   ;;  %s3566_s3 = inlined_call_operand.vmem [shape: f32[1,384], index: 3, kind: input, shape index: {}]   ;;  %s3567_s4 = inlined_call_operand.hbm [shape: bf16[128,128], index: 4, kind: input, shape index: {}]   ;;  %s3568_s5 = inlined_call_operand.vmem [shape: f32[1,128], index: 5, kind: input, shape index: {}]   ;;  %s3569_s6 = inlined_call_operand.vmem [shape: f32[1,128], index: 6, kind: input, shape index: {}]   ;;  %s3570_s7 = inlined_call_operand.vmem [shape: f32[1,128], index: 7, kind: input, shape index: {}]   ;;  %s3571_s8 = inlined_call_operand.hbm [shape: bf16[128,256], index: 8, kind: input, shape index: {}]   ;;  %s3572_s9 = inlined_call_operand.vmem [shape: f32[1,256], index: 9, kind: input, shape index: {}]   ;;  %s3573_s10 = inlined_call_operand.hbm [shape: bf16[256,128], index: 10, kind: input, shape index: {}]   ;;  %s3574_s11 = inlined_call_operand.vmem [shape: f32[1,128], index: 11, kind: input, shape index: {}]   ;;  %s3575_s12 = inlined_call_operand.vmem [shape: f32[1,128], index: 12, kind: input, shape index: {}]   ;;  %s3576_s13 = inlined_call_operand.vmem [shape: f32[1,128], index: 13, kind: input, shape index: {}]   ;;  %s3577_s14 = inlined_call_operand.hbm [shape: f32[2,16,128], index: 14, kind: output, shape index: {}]  }
   0x1   :  { %3591 = sst [smem:[#allocation24_spill]] %s3563_s0 }
   0x2   :  { %3592 = sst [smem:[#allocation25_spill]] %s3565_s2 }
   0x3   :  { %3593 = sst [smem:[#allocation26_spill]] %s3567_s4 }
   0x4   :  { %3594 = sst [smem:[#allocation27_spill]] %s3570_s7 }
   0x5   :  { %3595 = sst [smem:[#allocation28_spill]] %s3571_s8 }
   0x6   :  { %3596 = sst [smem:[#allocation29_spill]] %s3572_s9 }
   0x7   :  { %3597 = sst [smem:[#allocation30_spill]] %s3573_s10 }
   0x8   :  { %3598 = sst [smem:[#allocation31_spill]] %s3574_s11 }
   0x9   :  { %3599 = sst [smem:[#allocation32_spill]] %s3575_s12 }
   0xa   :  { %3600 = sst [smem:[#allocation33_spill]] %s3576_s13 }
   0xb   :  { %3601 = sst [smem:[#allocation34_spill]] %s3577_s14 }
   0xc   :  { %19 = vsyncpa [#allocation3], 0 }
   0xd   :  { %21 = vsyncpa [#allocation3 + $0x1], 0 }
   0xe   :  { %22 = vsyncpa [#allocation6], 0 }
   0xf   :  { %24 = vsyncpa [#allocation6 + $0x1], 0 }
  0x10   :  { %25 = vsyncpa [#allocation9], 0 }
  0x11   :  { %26 = vsyncpa [#allocation12], 0 }
  0x12   :  { %27 = vsyncpa [#allocation4], 0 }
  0x13   :  { %29 = vsyncpa [#allocation4 + $0x1], 0  ;;  %s3052_s29 = smov 0   ;;  %s3054_s30 = smov 0  }
  0x14   :  { %s3056_s15 = smov 0   ;;  %s3058_s16 = smov 0  }
  0x15   :  { %s3060_s17 = smov 0   ;;  %s3062_s18 = smov 0  }
  0x16 LB: > { %3602 = sst [smem:[#allocation20_spill]] %s2934_s29  ;;  %s3083_s19 = sadd.s32 4294967295, %s2954_s18   ;;  %s2954_s18 = sphi %s3062_s18, %s35_s18   ;;  %s2950_s17 = sphi %s3060_s17, %s3647_s17   ;;  %s2946_s16 = sphi %s3058_s16, %s3646_s16   ;;  %s2942_s15 = sphi %s3056_s15, %s3645_s15   ;;  %s2938_s30 = sphi %s3054_s30, %s3644_s30   ;;  %s2934_s29 = sphi %s3052_s29, %s3643_s29  }
  0x17   : > { %3603 = sst [smem:[#allocation21_spill]] %s2946_s16  ;;  %s2132_s20 = sadd.s32 4294967294, %s2954_s18  }
  0x18   : > { %p69_p0 = scmp.ne.s32.totalorder %s2938_s30, %s2934_s29  ;;  %p3581_p1 = scmp.eq.s32.totalorder %s3083_s19, 0 }
  0x19   : > { %p379_p3 = scmp.eq.s32.totalorder %s2132_s20, 1  ;;  %p2133_p5 = scmp.ge.s32.totalorder %s2954_s18, 1 }
  0x1a   : > { %p3092_p4 = por %p3581_p1, %p69_p0  ;;  %p386_p7 = scmp.lt.s32.totalorder %s2954_s18, 3 }
  0x1b   : > { %p3097_p6 = por %p379_p3, %p69_p0  ;;  %s2956_s24 = smov [#allocation7]  }
  0x1c   : > { %s3604_s21 = scalar_select %p3092_p4, 1, 0 }
  0x1d   : > { %s3605_s22 = scalar_select %p3097_p6, 1, 0 }
  0x1e   : > { %p3102_p8 = pnand %p2133_p5, %p386_p7  ;;  %s398_s25 = sshll.u32 %s2956_s24, 4  ;;  %s3106_s25 = int_to_ptr.vmem [resolvable:$true] %s398_s25 }
  0x1f   : > { %3606 = sst [smem:[#allocation22_spill]] %s3605_s22  ;;  %s2957_s27 = smov [#allocation8]  }
  0x20   : > { %s3607_s23 = scalar_select %p3102_p8, 1, 0 }
  0x21   : > { %p2404_p9 = pneg %p3102_p8  ;;  %s414_s28 = sshll.u32 %s2957_s27, 4  ;;  %s3117_s28 = int_to_ptr.vmem [resolvable:$true] %s414_s28 }
  0x22   : > { %s3609_s2 = sld [smem:[#allocation25_spill]] }
  0x23   : > { %p3113_p11 = pnand %p2404_p9, %p3581_p1 }
  0x25   : > { %p3127_p13 = pneg %p3113_p11 }
  0x28   : > { %s2684_s29 = scalar_lea.hbm %s3609_s2, 3072 }
  0x29   : > { %p2685_p12 = scmp.ne.s32.totalorder %s3609_s2, %s2684_s29  ;;  %p2691_p5 = scmp.lt.u32.totalorder %s2684_s29, %s3609_s2 }
  0x2b   : > { %p2687_p0 = pnand %p3127_p13, %p2685_p12 }
  0x2d   : > { %p2688_p3 = pneg %p2687_p0 }
  0x2f   : > { %p2693_p7 = pnand %p2691_p5, %p2688_p3 }
  0x31   : > { %2696 = shalt.err (!%p2693_p7)
}
  0x32   : > { %s2697_s14 = scalar_lea.vmem %s3106_s25, 3072  ;;  %p2705_p2 = scmp.lt.s32.totalorder %s3106_s25, %s3106_s25 }
  0x33   : > { %p2698_p9 = scmp.ne.s32.totalorder %s3106_s25, %s2697_s14  ;;  %p2706_p6 = scmp.lt.s32.totalorder %s2697_s14, %s2697_s14 }
  0x35   : > { %p2700_p10 = pnand %p2698_p9, %p3127_p13  ;;  %p2707_p12 = por %p2706_p6, %p2705_p2 }
  0x37   : > { %p2701_p1 = pneg %p2700_p10 }
  0x39   : > { %p2708_p0 = pnand %p2707_p12, %p2701_p1 }
  0x3b   : > { %2711 = shalt.err (!%p2708_p0)
}
  0x3c   : > { %s2958_s22 = smov 192   ;;  %s2959_s12 = smov 12  }
  0x3d   : > { %2407 = dma.hbm_to_vmem [thread:$0]  (!%p3113_p11), %s3609_s2, 3072, %s3106_s25, [#allocation6], %s2958_s22, %s2958_s22, %s2959_s12  }
  0x3e   : > { %s3611_s4 = sld [smem:[#allocation26_spill]] }
  0x44   : > { %s2712_s16 = scalar_lea.hbm %s3611_s4, 1024 }
  0x45   : > { %p2713_p2 = scmp.ne.s32.totalorder %s3611_s4, %s2712_s16  ;;  %p2719_p10 = scmp.lt.u32.totalorder %s2712_s16, %s3611_s4 }
  0x47   : > { %p2715_p1 = pnand %p2713_p2, %p3127_p13 }
  0x49   : > { %p2716_p6 = pneg %p2715_p1 }
  0x4b   : > { %p2721_p3 = pnand %p2719_p10, %p2716_p6 }
  0x4d   : > { %2724 = shalt.err (!%p2721_p3)
}
  0x4e   : > { %s2725_s25 = scalar_lea.vmem %s3117_s28, 1024  ;;  %p2733_p12 = scmp.lt.s32.totalorder %s3117_s28, %s3117_s28 }
  0x4f   : > { %p2726_p5 = scmp.ne.s32.totalorder %s3117_s28, %s2725_s25  ;;  %p2734_p0 = scmp.lt.s32.totalorder %s2725_s25, %s2725_s25 }
  0x51   : > { %p2728_p7 = pnand %p2726_p5, %p3127_p13  ;;  %p2735_p2 = por %p2734_p0, %p2733_p12 }
  0x53   : > { %p2729_p9 = pneg %p2728_p7 }
  0x55   : > { %p2736_p1 = pnand %p2735_p2, %p2729_p9 }
  0x57   : > { %2739 = shalt.err (!%p2736_p1)
}
  0x58   : > { %s3584_s9 = smov 64   ;;  %s3585_s7 = smov 4  }
  0x59   : > { %2410 = dma.hbm_to_vmem [thread:$0]  (!%p3113_p11), %s3611_s4, 1024, %s3117_s28, [#allocation9], %s3584_s9, %s3584_s9, %s3585_s7  }
  0x5a   : > { %s2962_s22 = smov [#allocation10]   ;;  %s3612_s8 = sld [smem:[#allocation28_spill]] }
  0x5b   : > { %s436_s12 = sshll.u32 %s2962_s22, 4  ;;  %s437_s12 = int_to_ptr.vmem [resolvable:$true] %s436_s12 }
  0x60   : > { %s2740_s24 = scalar_lea.hbm %s3612_s8, 2048 }
  0x61   : > { %p2741_p6 = scmp.ne.s32.totalorder %s3612_s8, %s2740_s24  ;;  %p2747_p5 = scmp.lt.u32.totalorder %s2740_s24, %s3612_s8 }
  0x63   : > { %p2743_p10 = pnand %p2741_p6, %p3127_p13 }
  0x65   : > { %p2744_p3 = pneg %p2743_p10 }
  0x67   : > { %p2749_p7 = pnand %p2747_p5, %p2744_p3 }
  0x69   : > { %2752 = shalt.err (!%p2749_p7)
}
  0x6a   : > { %s2753_s28 = scalar_lea.vmem %s437_s12, 2048  ;;  %p2761_p2 = scmp.lt.s32.totalorder %s437_s12, %s437_s12 }
  0x6b   : > { %p2754_p9 = scmp.ne.s32.totalorder %s437_s12, %s2753_s28  ;;  %p2762_p1 = scmp.lt.s32.totalorder %s2753_s28, %s2753_s28 }
  0x6d   : > { %p2756_p12 = pnand %p2754_p9, %p3127_p13  ;;  %p2763_p4 = por %p2762_p1, %p2761_p2 }
  0x6f   : > { %p2757_p0 = pneg %p2756_p12 }
  0x71   : > { %p2764_p8 = pnand %p2763_p4, %p2757_p0 }
  0x73   : > { %2767 = shalt.err (!%p2764_p8)
}
  0x74   : > { %s3586_s11 = smov 128   ;;  %s3588_s16 = smov 8  }
  0x75   : > { %2413 = dma.hbm_to_vmem [thread:$0]  (!%p3113_p11), %s3612_s8, 2048, %s437_s12, [#allocation9], %s3586_s11, %s3586_s11, %s3588_s16  }
  0x76   : > { %s2965_s29 = smov [#allocation11]   ;;  %s3613_s10 = sld [smem:[#allocation30_spill]] }
  0x77   : > { %s452_s20 = sshll.u32 %s2965_s29, 4  ;;  %s453_s20 = int_to_ptr.vmem [resolvable:$true] %s452_s20 }
  0x7c   : > { %s2768_s14 = scalar_lea.hbm %s3613_s10, 2048 }
  0x7d   : > { %p2769_p4 = scmp.ne.s32.totalorder %s3613_s10, %s2768_s14  ;;  %p2775_p10 = scmp.lt.u32.totalorder %s2768_s14, %s3613_s10 }
  0x7f   : > { %p2771_p8 = pnand %p2769_p4, %p3127_p13 }
  0x81   : > { %p2772_p6 = pneg %p2771_p8 }
  0x83   : > { %p2777_p3 = pnand %p2775_p10, %p2772_p6 }
  0x85   : > { %2780 = shalt.err (!%p2777_p3)
}
  0x86   : > { %s2781_s12 = scalar_lea.vmem %s453_s20, 2048  ;;  %p2789_p12 = scmp.lt.s32.totalorder %s453_s20, %s453_s20 }
  0x87   : > { %p2782_p5 = scmp.ne.s32.totalorder %s453_s20, %s2781_s12  ;;  %p2790_p0 = scmp.lt.s32.totalorder %s2781_s12, %s2781_s12 }
  0x89   : > { %p2784_p7 = pnand %p2782_p5, %p3127_p13  ;;  %p2791_p2 = por %p2790_p0, %p2789_p12 }
  0x8b   : > { %p2785_p9 = pneg %p2784_p7 }
  0x8d   : > { %p2792_p1 = pnand %p2791_p2, %p2785_p9 }
  0x8f   : > { %2795 = shalt.err (!%p2792_p1)
}
  0x90   : > { %s3614_s2 = smov 4   ;;  %s3615_s22 = smov 64  }
  0x91   : > { %2416 = dma.hbm_to_vmem [thread:$0]  (!%p3113_p11), %s3613_s10, 2048, %s453_s20, [#allocation12], %s3615_s22, %s3615_s22, %s3614_s2  }
  0x92   : > { %s47_s13 = sadd.s32 1, %s2950_s17  ;;  %s56_s26 = sadd.s32 1, %s2942_s15 }
  0x93   : > { %p49_p13 = scmp.ge.s32.totalorder %s47_s13, 2  ;;  %p63_p4 = scmp.ne.s32.totalorder %s2942_s15, %s2938_s30 }
  0x94   : > { %p64_p8 = scmp.eq.s32.totalorder %s2954_s18, 0  ;;  %p2432_p6 = scmp.lt.s32.totalorder %s2954_s18, 2 }
  0x95   : > { %s3649_s13 = smov (%p49_p13, %s47_s13), 0  ;;  %p3617_p3 = scmp.eq.s32.totalorder %s3083_s19, 1 }
  0x96   : > { %3616 = sst [smem:[#allocation23_spill]] %s3649_s13  ;;  %p65_p10 = por %p64_p8, %p63_p4 }
  0x97   : > { %p3226_p5 = por %p3617_p3, %p63_p4  ;;  %s51_s24 = ssub.s32 %s2950_s17, %s3649_s13 }
  0x98   : > { %s475_s27 = sand.u32 1, %s2942_s15   ;;  %p54_p7 = scmp.eq.s32.totalorder %s51_s24, 0 }
  0x99   : > { %s3233_s20 = sshll.u32 %s475_s27, 4  ;;  %s2235_s14 = sshll.u32 %s2950_s17, 8 }
  0x9a   : > { %s3237_s25 = scalar_select %p54_p7, %s2942_s15, %s56_s26  }
  0x9b   : > { %s3619_s0 = sld [smem:[#allocation24_spill]]  ;;  %s479_s22 = scalar_lea.vmem [#allocation2], %s3233_s20 }
  0x9c   : > { %s488_s9 = sshll.u32 %s479_s22, 4  ;;  %p3247_p11 = pnand %p2432_p6, %p65_p10  ;;  %s3251_s9 = int_to_ptr.vmem [resolvable:$true] %s488_s9 }
  0x9d   : > { %s3256_s28 = scalar_lea.hbm %s3564_s1, %s2235_s14  ;;  %s3258_s12 = scalar_lea.sflag [#allocation3], %s475_s27 }
  0x9e   : > { %p2798_p12 = pneg %p3247_p11 }
  0xa1   : > { %s3242_s2 = scalar_lea.hbm %s3619_s0, %s2235_s14  ;;  %s2801_s4 = scalar_lea.hbm %s3619_s0, 512 }
  0xa2   : > { %s2796_s11 = scalar_lea.hbm %s3242_s2, 256  ;;  %p2802_p1 = scmp.lt.u32.totalorder %s3242_s2, %s3619_s0 }
  0xa3   : > { %p2797_p9 = scmp.ne.s32.totalorder %s3242_s2, %s2796_s11  ;;  %p2803_p13 = scmp.lt.u32.totalorder %s2801_s4, %s2796_s11 }
  0xa4   : > { %p2805_p8 = scmp.lt.u32.totalorder %s2796_s11, %s3242_s2 }
  0xa5   : > { %p2799_p0 = pnand %p2798_p12, %p2797_p9  ;;  %p2804_p4 = por %p2803_p13, %p2802_p1 }
  0xa7   : > { %p2800_p2 = pneg %p2799_p0  ;;  %p2806_p6 = por %p2805_p8, %p2804_p4 }
  0xa9   : > { %p2807_p10 = pnand %p2806_p6, %p2800_p2 }
  0xab   : > { %2810 = shalt.err (!%p2807_p10)
}
  0xac   : > { %s2811_s27 = scalar_lea.vmem %s3251_s9, 256  ;;  %s2966_s16 = smov [#allocation2]  }
  0xad   : > { %p2812_p3 = scmp.ne.s32.totalorder %s3251_s9, %s2811_s27  ;;  %s2816_s14 = sshll.u32 %s2966_s16, 4  ;;  %s2817_s14 = int_to_ptr.vmem [resolvable:$false] %s2816_s14 }
  0xae   : > { %s2818_s8 = scalar_lea.vmem %s2817_s14, 512  ;;  %p2819_p0 = scmp.lt.s32.totalorder %s3251_s9, %s2817_s14 }
  0xaf   : > { %p2814_p7 = pnand %p2812_p3, %p2798_p12  ;;  %p2820_p1 = scmp.lt.s32.totalorder %s2818_s8, %s2811_s27 }
  0xb1   : > { %p2815_p9 = pneg %p2814_p7  ;;  %p2821_p13 = por %p2820_p1, %p2819_p0 }
  0xb3   : > { %p2822_p4 = pnand %p2821_p13, %p2815_p9 }
  0xb5   : > { %2825 = shalt.err (!%p2822_p4)
}
  0xb6   : > { %s3621_s4 = smov 8   ;;  %s3622_s10 = smov 128  }
  0xb7   : > { %2420 = dma.hbm_to_vmem [thread:$0]  (!%p3247_p11), %s3242_s2, 256, %s3251_s9, %s3258_s12, %s3622_s10, %s3622_s10, %s3621_s4  }
  0xb8   : > { %s502_s11 = scalar_lea.vmem [#allocation5], %s3233_s20  ;;  %s498_s24 = sand.u32 1, %s2954_s18  }
  0xb9   : > { %s509_s26 = sshll.u32 %s502_s11, 4  ;;  %s3293_s22 = scalar_lea.sflag [#allocation6], %s498_s24  ;;  %s3291_s26 = int_to_ptr.vmem [resolvable:$true] %s509_s26 }
  0xba   : > { %s2826_s27 = scalar_lea.hbm %s3256_s28, 256  ;;  %s2831_s8 = scalar_lea.hbm %s3564_s1, 512 }
  0xbb   : > { %p2827_p2 = scmp.ne.s32.totalorder %s3256_s28, %s2826_s27  ;;  %p2832_p10 = scmp.lt.u32.totalorder %s3256_s28, %s3564_s1 }
  0xbc   : > { %p2833_p3 = scmp.lt.u32.totalorder %s2831_s8, %s2826_s27  ;;  %p2835_p9 = scmp.lt.u32.totalorder %s2826_s27, %s3256_s28 }
  0xbd   : > { %p2829_p8 = pnand %p2827_p2, %p2798_p12 }
  0xbe   : > { %p2834_p7 = por %p2833_p3, %p2832_p10 }
  0xbf   : > { %p2830_p6 = pneg %p2829_p8 }
  0xc0   : > { %p2836_p0 = por %p2835_p9, %p2834_p7 }
  0xc2   : > { %p2837_p1 = pnand %p2836_p0, %p2830_p6 }
  0xc4   : > { %2840 = shalt.err (!%p2837_p1)
}
  0xc5   : > { %s2841_s20 = scalar_lea.vmem %s3291_s26, 256  ;;  %s2967_s2 = smov [#allocation5]  }
  0xc6   : > { %p2842_p13 = scmp.ne.s32.totalorder %s3291_s26, %s2841_s20  ;;  %s2846_s9 = sshll.u32 %s2967_s2, 4  ;;  %s2847_s9 = int_to_ptr.vmem [resolvable:$false] %s2846_s9 }
  0xc7   : > { %s2848_s0 = scalar_lea.vmem %s2847_s9, 512  ;;  %p2849_p8 = scmp.lt.s32.totalorder %s3291_s26, %s2847_s9 }
  0xc8   : > { %p2844_p4 = pnand %p2842_p13, %p2798_p12  ;;  %p2850_p10 = scmp.lt.s32.totalorder %s2848_s0, %s2841_s20 }
  0xca   : > { %p2845_p2 = pneg %p2844_p4  ;;  %p2851_p3 = por %p2850_p10, %p2849_p8 }
  0xcc   : > { %p2852_p7 = pnand %p2851_p3, %p2845_p2 }
  0xce   : > { %2855 = shalt.err (!%p2852_p7)
}
  0xcf   : > { %2423 = dma.hbm_to_vmem [thread:$0]  (!%p3247_p11), %s3256_s28, 256, %s3291_s26, %s3293_s22, %s3622_s10, %s3622_s10, %s3621_s4  }
  0xd0   : > { %p3623_p12 = scmp.ne.s32.totalorder %s3607_s23, 0 }
  0xd1   : > { %s3325_s13 = sand.u32 (!%p3623_p12), 1, %s2938_s30   ;;  %p3624_p6 = scmp.ne.s32.totalorder (!%p3623_p12), %s3604_s21, 0 }
  0xd2   : > { %521 = sbr.rel (%p3623_p12) target bundleno = 2795 (0xaeb), region = 76  ;;  %s2146_s12 = sshll.u32 (!%p3623_p12), %s3325_s13, 4 }
  0xd3   : > { %s524_s11 = scalar_lea.sflag (!%p3623_p12), [#allocation3], %s3325_s13  ;;  %s3331_s7 = scalar_lea.vmem (!%p3623_p12), [#allocation2], %s2146_s12 }
  0xd9   : > { %2909 = dma.done.wait (%p3624_p6), %s524_s11, 256  }
  0xda   : > { %2911 = vsyncadd (%p3624_p6), %s524_s11, 4294967040  ;;  %s532_s23 = sand.u32 1, %s3083_s19  }
  0xdb   : > { %s533_s28 = scalar_lea.sflag [#allocation6], %s532_s23 }
  0xdc   : > { %2913 = dma.done.wait (%p3624_p6), %s533_s28, 256  }
  0xdd   : > { %2915 = vsyncadd (%p3624_p6), %s533_s28, 4294967040  ;;  %p3625_p11 = scmp.eq.s32.totalorder %s3083_s19, 0 }
  0xdf   : > { %2917 = dma.done.wait (%p3625_p11), [#allocation6], 3072   ;;  %p3626_p9 = pmov %p3625_p11 }
  0xe1   : > { %2919 = vsyncadd (%p3626_p9), [#allocation6], 4294964224  ;;  %p3627_p0 = pmov %p3626_p9 }
  0xe3   : > { %2921 = dma.done.wait (%p3627_p0), [#allocation9], 3072   ;;  %p3628_p1 = pmov %p3627_p0 }
  0xe4   : > { %p3629_p13 = pmov %p3627_p0 }
  0xe5   : > { %2923 = vsyncadd (%p3628_p1), [#allocation9], 4294964224 }
  0xe6   : > { %2925 = dma.done.wait (%p3629_p13), [#allocation12], 2048   ;;  %p3630_p4 = pmov %p3627_p0 }
  0xe7   : > { %v2968_v0 = vmov 0   ;;  %v2969_v1 = vmov 0.0   ;;  %v2564_v2 = vld [vmem:[#allocation7 + $0x4] ss:$12 sps:$4 sm:$0xff]   ;;  %v2566_v3 = vld [vmem:[#allocation7] ss:$12 sps:$4 sm:$0xff]   ;;  %v642_v29 = vlaneseq }
  0xe8   : > { %2927 = vsyncadd (%p3630_p4), [#allocation12], 4294965248  ;;  %817 = vmatprep.mubr.bf16.mxu0 %v2968_v0  ;;  %2294 = vmatprep.subr.bf16.mxu1 %v2969_v1  ;;  %v2567_v4 = vld [vmem:[#allocation7 + $0x1c] ss:$12 sps:$4 sm:$0xff]   ;;  %v2569_v5 = vld [vmem:[#allocation7 + $0x18] ss:$12 sps:$4 sm:$0xff]  }
  0xe9   : > { %785 = vmatprep.subr.bf16.mxu0 %v2564_v2  ;;  %v2570_v6 = vld [vmem:[#allocation7 + $0x34] ss:$12 sps:$4 sm:$0xff]   ;;  %v2572_v7 = vld [vmem:[#allocation7 + $0x30] ss:$12 sps:$4 sm:$0xff]   ;;  %v2573_v8 = vld [vmem:[#allocation7 + $0x4c] ss:$12 sps:$4 sm:$0xff]  }
  0xea   : > { %786 = vmatpush1.bf16.msra.mxu0 %v2566_v3  ;;  %v2575_v9 = vld [vmem:[#allocation7 + $0x48] ss:$12 sps:$4 sm:$0xff]   ;;  %v2576_v10 = vld [vmem:[#allocation7 + $0x64] ss:$12 sps:$4 sm:$0xff]   ;;  %v2589_v12 = vld [vmem:[#allocation7 + $0x20] ss:$12 sps:$4 sm:$0xff]  }
  0xeb   : > { %787 = vmatprep.subr.bf16.mxu0 %v2567_v4  ;;  %v2588_v11 = vld [vmem:[#allocation7 + $0x8] ss:$12 sps:$4 sm:$0xff]   ;;  %v2578_v13 = vld [vmem:[#allocation7 + $0x60] ss:$12 sps:$4 sm:$0xff]   ;;  %v2581_v15 = vld [vmem:[#allocation7 + $0x78] ss:$12 sps:$4 sm:$0xff]  }
  0xec   : > { %2295 = vmatpush3.bf16.msra.mxu1 %v2588_v11  ;;  %v2579_v14 = vld [vmem:[#allocation7 + $0x7c] ss:$12 sps:$4 sm:$0xff]   ;;  %v2582_v16 = vld [vmem:[#allocation7 + $0x94] ss:$12 sps:$4 sm:$0xff]   ;;  %v2590_v17 = vld [vmem:[#allocation7 + $0x38] ss:$12 sps:$4 sm:$0xff]  }
  0xed   : > { %2296 = vmatprep.subr.bf16.mxu1 %v2969_v1  ;;  %v2591_v18 = vld [vmem:[#allocation7 + $0x50] ss:$12 sps:$4 sm:$0xff]   ;;  %v2585_v20 = vld [vmem:[#allocation7 + $0xac] ss:$12 sps:$4 sm:$0xff]   ;;  %v2592_v21 = vld [vmem:[#allocation7 + $0x68] ss:$12 sps:$4 sm:$0xff]  }
  0xee   : > { %788 = vmatpush1.bf16.msra.mxu0 %v2569_v5  ;;  %v2584_v19 = vld [vmem:[#allocation7 + $0x90] ss:$12 sps:$4 sm:$0xff]   ;;  %v2587_v22 = vld [vmem:[#allocation7 + $0xa8] ss:$12 sps:$4 sm:$0xff]   ;;  %v2593_v25 = vld [vmem:[#allocation7 + $0x80] ss:$12 sps:$4 sm:$0xff]  }
  0xef   : > { %789 = vmatprep.subr.bf16.mxu0 %v2570_v6  ;;  %v3360_v23 = vld [vmem:[%s3331_s7] sm:$0xff]  ;;  %v3363_v24 = vld [vmem:[%s3331_s7 + $0x8] sm:$0xff]  ;;  %vm2970_vm0 = vmmov 0   ;;  %v3379_v30 = vshrl.u32 %v642_v29, 7  ;;  %vm943_vm1 = vcmask 261120   ;;  %s2971_s4 = smov 64  }
  0xf0   : > { %2297 = vmatpush3.bf16.msra.mxu1 %v2589_v12  ;;  %v607_v26 = vpack.c.bf16 %v3363_v24, %v3360_v23  ;;  %v2594_v27 = vld [vmem:[#allocation7 + $0x98] ss:$12 sps:$4 sm:$0xff]   ;;  %v2595_v28 = vld [vmem:[#allocation7 + $0xb0] ss:$12 sps:$4 sm:$0xff]   ;;  %2310 = vmatprep.mubr.msk.bf16.mxu1 %vm2970_vm0, %v2969_v1  ;;  %v640_v32 = vld [vmem:[%s3566_s3] sm:$0x7] }
  0xf1   : > { %2298 = vmatprep.subr.bf16.mxu1 %v2969_v1  ;;  %v644_v31 = vsub.s32 0, %v3379_v30  ;;  %v648_v33 = vsub.s32 1, %v3379_v30  ;;  %s2972_s10 = smov 96   ;;  %s2973_s26 = smov 32   ;;  %v652_v52 = vsub.s32 2, %v3379_v30  ;;  %vm1132_vm2 = vcmask 130048  }
  0xf2   : > { %790 = vmatpush1.bf16.msra.mxu0 %v2572_v7  ;;  %vm1427_vm3 = vcmask 523264   ;;  %vm1430_vm4 = vcmask 785408   ;;  %s3631_s20 = sld [smem:[#allocation27_spill]]  ;;  %s3632_s0 = sld [smem:[#allocation29_spill]] }
  0xf3   : > { %791 = vmatprep.subr.bf16.mxu0 %v2573_v8  ;;  %v645_v34 = vrot.slane %v640_v32, %v644_v31  ;;  %v649_v36 = vrot.slane %v640_v32, %v648_v33  ;;  %v653_v56 = vrot.slane %v640_v32, %v652_v52  ;;  %s3633_s23 = sld [smem:[#allocation31_spill]]  ;;  %s3634_s28 = sld [smem:[#allocation21_spill]] }
  0xf4   : > { %2299 = vmatpush3.bf16.msra.mxu1 %v2590_v17  ;;  %s3636_s24 = sld [smem:[#allocation33_spill]]  ;;  %s601_s27 = scalar_lea.vmem [#allocation13], %s2146_s12 }
  0xf5   : > { %2300 = vmatprep.subr.bf16.mxu1 %v2969_v1  ;;  %s1983_s16 = sshll.u32 %s601_s27, 4  ;;  %s1968_s9 = scalar_lea.sflag [#allocation4], %s3325_s13  ;;  %s3514_s16 = int_to_ptr.vmem [resolvable:$true] %s1983_s16 }
  0xf6   : > { %792 = vmatpush1.bf16.msra.mxu0 %v2575_v9  ;;  %s2974_s12 = smov [#allocation13]  }
  0xf7   : > { %793 = vmatprep.subr.bf16.mxu0 %v2576_v10  ;;  %s2860_s11 = sshll.u32 %s2974_s12, 4  ;;  %s2861_s11 = int_to_ptr.vmem [resolvable:$false] %s2860_s11 }
  0xf8   : > { %2301 = vmatpush3.bf16.msra.mxu1 %v2591_v18  ;;  %s2862_s7 = scalar_lea.vmem %s2861_s11, 512  ;;  %p2863_p3 = scmp.lt.s32.totalorder %s3514_s16, %s2861_s11 }
  0xf9   : > { %2302 = vmatprep.subr.bf16.mxu1 %v2969_v1  ;;  %v2211_v30 = vld [vmem:[%s3633_s23] ss:$0 sm:$0xff]  ;;  %s2237_s22 = sshll.u32 %s3634_s28, 8 }
  0xfa   : > { %794 = vmatpush1.bf16.msra.mxu0 %v2578_v13 }
  0xfb   : > { %795 = vmatprep.subr.bf16.mxu0 %v2579_v14 }
  0xfc   : > { %2303 = vmatpush3.bf16.msra.mxu1 %v2592_v21 }
  0xfd   : > { %2304 = vmatprep.subr.bf16.mxu1 %v2969_v1 }
  0xfe   : > { %796 = vmatpush1.bf16.msra.mxu0 %v2581_v15 }
  0xff   : > { %797 = vmatprep.subr.bf16.mxu0 %v2582_v16 }
 0x100   : > { %2305 = vmatpush3.bf16.msra.mxu1 %v2593_v25 }
 0x101   : > { %2306 = vmatprep.subr.bf16.mxu1 %v2969_v1 }
 0x102   : > { %798 = vmatpush1.bf16.msra.mxu0 %v2584_v19 }
 0x103   : > { %799 = vmatprep.subr.bf16.mxu0 %v2585_v20 }
 0x104   : > { %2307 = vmatpush3.bf16.msra.mxu1 %v2594_v27 }
 0x105   : > { %2308 = vmatprep.subr.bf16.mxu1 %v2969_v1 }
 0x106   : > { %800 = vmatpush1.bf16.msra.mxu0 %v2587_v22 }
 0x107   : > { %2338 = vmatprep.subr.bf16.mxu0 %v2969_v1 }
 0x108   : > { %2309 = vmatpush3.bf16.msra.mxu1 %v2595_v28 }
 0x109   : > { %818 = vmatmul.mubr.bf16.vlgmr.msra.gmra.mrb[0].mxu0 %v607_v26  ;;  %2314 = vmatprep.subr.bf16.mxu1 %v2969_v1 }
 0x10a   : > { %2340 = vmatprep.mubr.msk.bf16.mxu0 %vm2970_vm0, %v2969_v1 }
 0x10b   : > { %2311 = vmatmul.mubr.bf16.vlgmr.msra.gmra.mrb[0].mxu1 %v607_v26 }
 0x10c   : > { %2316 = vmatprep.mubr.msk.bf16.mxu1 %vm2970_vm0, %v2969_v1 }
 0x1dc   : > { %v819_v35 = vpop.f32.mrb[0].mxu0 }
 0x1dd   : > { %v820_v37 = vadd.f32 %v819_v35, %v645_v34  ;;  %v821_v38 = vpop.f32.mrb[1].mxu0 }
 0x1de   : > { %v823_v39 = vpop.f32.mrb[2].mxu0  ;;  %v822_v42 = vadd.f32 %v821_v38, %v649_v36  ;;  %v862_v51 = vpop.f32.mrb[0].mxu1 }
 0x1df   : > { %v824_v40 = vadd.f32 %v823_v39, %v645_v34  ;;  %v825_v41 = vpop.f32.mrb[3].mxu0  ;;  %v869_v44 = vmul.f32 0.17677669, %v820_v37  ;;  %v2312_v53 = vpop.f32.mrb[1].mxu1  ;;  %v3402_v57 = vadd.f32 %v862_v51, %v653_v56 }
 0x1e0   : > { %v826_v43 = vadd.f32 %v825_v41, %v649_v36  ;;  %v865_v54 = vpop.f32.mrb[2].mxu1 }
 0x1e1   : > { %v870_v45 = vmul.f32 0.17677669, %v824_v40  ;;  %v2313_v55 = vpop.f32.mrb[3].mxu1  ;;  %v3404_v58 = vadd.f32 %v865_v54, %v653_v56 }
 0x1e2   : > { %v2514_v46 = vpack.i.bf16 %v826_v43, %v822_v42  ;;  %v915_v47 = vpack.c.bf16 %v826_v43, %v822_v42 }
 0x1e3   : > { %v891_v48 = vpack.c.bf16 %v870_v45, %v869_v44  ;;  %v2519_v49 = vpack.i.bf16 %v870_v45, %v869_v44  ;;  %v939_v59 = vpack.c.bf16 %v3404_v58, %v3402_v57 }
 0x1e4   : > { %2515 = vrot.lane.b32.xlu1 %v2514_v46, %s2971_s4  ;;  %2505 = vrot.lane.b32.xlu0 %v2514_v46, %s2972_s10  ;;  %v948_v50 = vsel %vm943_vm1, %v915_v47, 0 }
 0x1e5   : > { %2315 = vmatpush3.bf16.xpose.msra.mxu1 %v948_v50  ;;  %2339 = vmatpush3.bf16.msra.mxu0 %v939_v59  ;;  %v2534_v59 = vpack.i.bf16 %v3404_v58, %v3402_v57 }
 0x1e6   : > { %2320 = vmatprep.subr.bf16.mxu1 %v2969_v1  ;;  %2350 = vmatprep.subr.bf16.mxu0 %v2969_v1 }
 0x1e8   : > { %2520 = vrot.lane.b32.xlu1 %v2519_v49, %s2971_s4  ;;  %2510 = vrot.lane.b32.xlu0 %v2519_v49, %s2972_s10 }
 0x1ec   : > { %2530 = vrot.lane.b32.xlu1 %v2519_v49, %s2973_s26  ;;  %2525 = vrot.lane.b32.xlu0 %v2514_v46, %s2973_s26 }
 0x1ed   : > { %2317 = vmatmul.mubr.msk.bf16.vlgmr.msra.gmra.mrb[4].mxu1 %vm943_vm1, %v891_v48 }
 0x1ee   : > { %2322 = vmatprep.mubr.msk.bf16.mxu1 %vm2970_vm0, %v2969_v1 }
 0x256   : > { %v2506_v60 = vpop.permute.xlu0 %2505  ;;  %v2516_v63 = vpop.permute.xlu1 %2515 }
 0x257   : > { %v2508_v61 = vunpack.i.h.bf16 %v2506_v60  ;;  %v2507_v62 = vunpack.i.l.bf16 %v2506_v60  ;;  %v2518_v4 = vunpack.i.h.bf16 %v2516_v63  ;;  %v2517_v5 = vunpack.i.l.bf16 %v2516_v63 }
 0x259   : > { %v916_v2 = vpack.c.bf16 %v2508_v61, %v2507_v62  ;;  %v917_v9 = vpack.c.bf16 %v2518_v4, %v2517_v5 }
 0x25a   : > { %v2511_v3 = vpop.permute.xlu0 %2510  ;;  %v2521_v12 = vpop.permute.xlu1 %2520 }
 0x25b   : > { %v995_v6 = vsel %vm943_vm1, %v916_v2, 0  ;;  %v2513_v7 = vunpack.i.h.bf16 %v2511_v3  ;;  %v2512_v8 = vunpack.i.l.bf16 %v2511_v3  ;;  %v1042_v15 = vsel %vm943_vm1, %v917_v9, 0 }
 0x25c   : > { %2321 = vmatpush3.bf16.xpose.msra.mxu1 %v995_v6  ;;  %v2523_v16 = vunpack.i.h.bf16 %v2521_v12  ;;  %v2522_v17 = vunpack.i.l.bf16 %v2521_v12 }
 0x25d   : > { %2326 = vmatprep.subr.bf16.mxu1 %v2969_v1  ;;  %v892_v11 = vpack.c.bf16 %v2513_v7, %v2512_v8 }
 0x25e   : > { %v2526_v10 = vpop.permute.xlu0 %2525  ;;  %v893_v19 = vpack.c.bf16 %v2523_v16, %v2522_v17  ;;  %v2531_v20 = vpop.permute.xlu1 %2530 }
 0x25f   : > { %v2528_v13 = vunpack.i.h.bf16 %v2526_v10  ;;  %v2527_v14 = vunpack.i.l.bf16 %v2526_v10  ;;  %v2533_v22 = vunpack.i.h.bf16 %v2531_v20  ;;  %v2532_v25 = vunpack.i.l.bf16 %v2531_v20 }
 0x261   : > { %v918_v18 = vpack.c.bf16 %v2528_v13, %v2527_v14  ;;  %v894_v26 = vpack.c.bf16 %v2533_v22, %v2532_v25 }
 0x263   : > { %2323 = vmatmul.mubr.msk.bf16.vlgmr.msra.gmra.mrb[8].mxu1 %vm943_vm1, %v892_v11  ;;  %v1089_v21 = vsel %vm943_vm1, %v918_v18, 0 }
 0x264   : > { %2327 = vmatpush3.bf16.xpose.msra.mxu1 %v1042_v15  ;;  %2328 = vmatprep.mubr.msk.bf16.mxu1 %vm2970_vm0, %v2969_v1 }
 0x265   : > { %2332 = vmatprep.subr.bf16.mxu1 %v2969_v1 }
 0x26b   : > { %2329 = vmatmul.mubr.msk.bf16.vlgmr.msra.gmra.mrb[12].mxu1 %vm943_vm1, %v893_v19 }
 0x26c   : > { %2333 = vmatpush3.bf16.xpose.msra.mxu1 %v1089_v21  ;;  %2334 = vmatprep.mubr.msk.bf16.mxu1 %vm2970_vm0, %v2969_v1 }
 0x26d   : > { %2344 = vmatprep.subr.bf16.mxu1 %v2969_v1 }
 0x273   : > { %2335 = vmatmul.mubr.msk.bf16.vlgmr.msra.gmra.mrb[16].mxu1 %vm943_vm1, %v894_v26 }
 0x274   : > { %2346 = vmatprep.mubr.msk.bf16.mxu1 %vm2970_vm0, %v2969_v1 }
 0x2c0   : > { %v984_v27 = vpop.f32.mrb[4].mxu1 }
 0x2c1   : > { %v2318_v28 = vpop.f32.mrb[5].mxu1  ;;  %v1133_v29 = vsel %vm1132_vm2, %v984_v27, -inf }
 0x2c2   : > { %1134 = vmax.xlane.f32.xlu0 %v1133_v29  ;;  %v987_v32 = vpop.f32.mrb[6].mxu1 }
 0x2c3   : > { %v2319_v34 = vpop.f32.mrb[7].mxu1  ;;  %v1136_v35 = vsel %vm1132_vm2, %v987_v32, -inf }
 0x2c4   : > { %1137 = vmax.xlane.f32.xlu1 %v1136_v35 }
 0x336   : > { %v1031_v36 = vpop.f32.mrb[8].mxu1 }
 0x337   : > { %v2324_v37 = vpop.f32.mrb[9].mxu1  ;;  %v1139_v38 = vsel %vm1132_vm2, %v1031_v36, -inf }
 0x338   : > { %1140 = vmax.xlane.f32.xlu0 %v1139_v38  ;;  %v1034_v39 = vpop.f32.mrb[10].mxu1 }
 0x339   : > { %v2325_v40 = vpop.f32.mrb[11].mxu1  ;;  %v1142_v41 = vsel %vm1132_vm2, %v1034_v39, -inf }
 0x33c   : > { %1143 = vmax.xlane.f32.xlu0 %v1142_v41 }
 0x33e   : > { %v1078_v42 = vpop.f32.mrb[12].mxu1 }
 0x33f   : > { %v2330_v43 = vpop.f32.mrb[13].mxu1  ;;  %v1145_v44 = vsel %vm1132_vm2, %v1078_v42, -inf }
 0x340   : > { %1146 = vmax.xlane.f32.xlu1 %v1145_v44  ;;  %v1081_v45 = vpop.f32.mrb[14].mxu1 }
 0x341   : > { %v2331_v46 = vpop.f32.mrb[15].mxu1  ;;  %v1148_v47 = vsel %vm1132_vm2, %v1081_v45, -inf }
 0x342   : > { %1149 = vmax.xlane.f32.xlu0 %v1148_v47 }
 0x346   : > { %v1125_v48 = vpop.f32.mrb[16].mxu1 }
 0x347   : > { %v2336_v49 = vpop.f32.mrb[17].mxu1  ;;  %v1151_v50 = vsel %vm1132_vm2, %v1125_v48, -inf }
 0x348   : > { %1152 = vmax.xlane.f32.xlu1 %v1151_v50  ;;  %v1128_v51 = vpop.f32.mrb[18].mxu1 }
 0x349   : > { %v2337_v52 = vpop.f32.mrb[19].mxu1  ;;  %v1154_v53 = vsel %vm1132_vm2, %v1128_v51, -inf }
 0x34a   : > { %1155 = vmax.xlane.f32.xlu0 %v1154_v53 }
 0x34f   : > { %v1135_v62 = vpop.xlane.xlu0 %1134 }
 0x350   : > { %v1157_v63 = vsub.f32 %v984_v27, %v1135_v62 }
 0x351   : > { %v1138_v54 = vpop.xlane.xlu1 %1137 }
 0x352   : > { %v1158_v55 = vsub.f32 %v987_v32, %v1138_v54  ;;  %v1165_v2 = vmul.f32 1.442695, %v1157_v63 }
 0x354   : > { %v1167_v56 = vmul.f32 1.442695, %v1158_v55 }
 0x356   : > { %2644 = vpow2.f32 %v1167_v56 }
 0x357   : > { %2646 = vpow2.f32 %v1165_v2 }
 0x359   : > { %2535 = vrot.lane.b32.xlu1 %v2534_v59, %s2972_s10 }
 0x360   : > { %v3435_v60 = vpop.eup %2644 }
 0x361   : > { %v1184_v61 = vsel %vm1132_vm2, %v3435_v60, 0.0  ;;  %v2647_v3 = vpop.eup %2646 }
 0x362   : > { %1185 = vadd.xlane.f32.xlu0 %v1184_v61  ;;  %v1181_v4 = vsel %vm1132_vm2, %v2647_v3, 0.0 }
 0x37d   : > { %1182 = vadd.xlane.f32.xlu1 %v1181_v4 }
 0x3c5   : > { %v1141_v5 = vpop.xlane.xlu0 %1140 }
 0x3c6   : > { %v1159_v6 = vsub.f32 %v1031_v36, %v1141_v5 }
 0x3c8   : > { %v1169_v7 = vmul.f32 1.442695, %v1159_v6 }
 0x3c9   : > { %v1144_v57 = vpop.xlane.xlu0 %1143 }
 0x3ca   : > { %2648 = vpow2.f32 %v1169_v7  ;;  %v1160_v58 = vsub.f32 %v1034_v39, %v1144_v57 }
 0x3cc   : > { %v1171_v8 = vmul.f32 1.442695, %v1160_v58 }
 0x3cd   : > { %v1147_v9 = vpop.xlane.xlu1 %1146 }
 0x3ce   : > { %2650 = vpow2.f32 %v1171_v8  ;;  %v1161_v10 = vsub.f32 %v1078_v42, %v1147_v9 }
 0x3cf   : > { %v1150_v11 = vpop.xlane.xlu0 %1149 }
 0x3d0   : > { %v1173_v12 = vmul.f32 1.442695, %v1161_v10  ;;  %v1162_v13 = vsub.f32 %v1081_v45, %v1150_v11 }
 0x3d2   : > { %2652 = vpow2.f32 %v1173_v12  ;;  %v1175_v14 = vmul.f32 1.442695, %v1162_v13 }
 0x3d4   : > { %v2649_v15 = vpop.eup %2648  ;;  %2654 = vpow2.f32 %v1175_v14 }
 0x3d5   : > { %v1153_v16 = vpop.xlane.xlu1 %1152  ;;  %v1187_v17 = vsel %vm1132_vm2, %v2649_v15, 0.0 }
 0x3d6   : > { %v1163_v18 = vsub.f32 %v1125_v48, %v1153_v16  ;;  %1188 = vadd.xlane.f32.xlu1 %v1187_v17  ;;  %v2596_v16 = vld [vmem:[#allocation8] sm:$0xff]   ;;  %v2597_v17 = vld [vmem:[#allocation8 + $0x8] sm:$0xff]  }
 0x3d7   : > { %v1156_v19 = vpop.xlane.xlu0 %1155 }
 0x3d8   : > { %v2651_v20 = vpop.eup %2650  ;;  %v1177_v21 = vmul.f32 1.442695, %v1163_v18  ;;  %v1164_v22 = vsub.f32 %v1128_v51, %v1156_v19  ;;  %v2598_v18 = vld [vmem:[#allocation8 + $0x10] sm:$0xff]  }
 0x3d9   : > { %v2536_v25 = vpop.permute.xlu1 %2535  ;;  %v1190_v26 = vsel %vm1132_vm2, %v2651_v20, 0.0 }
 0x3da   : > { %2656 = vpow2.f32 %v1177_v21  ;;  %v1179_v27 = vmul.f32 1.442695, %v1164_v22  ;;  %v2538_v28 = vunpack.i.h.bf16 %v2536_v25  ;;  %v2537_v29 = vunpack.i.l.bf16 %v2536_v25  ;;  %1191 = vadd.xlane.f32.xlu0 %v1190_v26  ;;  %v2599_v25 = vld [vmem:[#allocation8 + $0x18] sm:$0xff]   ;;  %v2601_v26 = vld [vmem:[#allocation8 + $0x28] sm:$0xff]  }
 0x3dc   : > { %v2653_v32 = vpop.eup %2652  ;;  %2658 = vpow2.f32 %v1179_v27  ;;  %v940_v34 = vpack.c.bf16 %v2538_v28, %v2537_v29 }
 0x3dd   : > { %v1193_v35 = vsel %vm1132_vm2, %v2653_v32, 0.0 }
 0x3de   : > { %v2655_v36 = vpop.eup %2654  ;;  %1194 = vadd.xlane.f32.xlu1 %v1193_v35  ;;  %2345 = vmatpush3.bf16.msra.mxu1 %v940_v34 }
 0x3df   : > { %v1196_v37 = vsel %vm1132_vm2, %v2655_v36, 0.0  ;;  %2356 = vmatprep.subr.bf16.mxu1 %v2969_v1 }
 0x3e0   : > { %1197 = vadd.xlane.f32.xlu0 %v1196_v37 }
 0x3e4   : > { %v2657_v38 = vpop.eup %2656 }
 0x3e5   : > { %v1199_v39 = vsel %vm1132_vm2, %v2657_v38, 0.0 }
 0x3e6   : > { %v2659_v40 = vpop.eup %2658  ;;  %1200 = vadd.xlane.f32.xlu1 %v1199_v39 }
 0x3e7   : > { %v1202_v41 = vsel %vm1132_vm2, %v2659_v40, 0.0 }
 0x3e8   : > { %1203 = vadd.xlane.f32.xlu0 %v1202_v41 }
 0x3ef   : > { %v1186_v42 = vpop.xlane.xlu0 %1185 }
 0x3f0   : > { %2660 = vrcp.f32 %v1186_v42 }
 0x3f7   : > { %2545 = vrot.lane.b32.xlu1 %v2534_v59, %s2973_s26 }
 0x3fa   : > { %v2661_v44 = vpop.eup %2660 }
 0x3fb   : > { %v1214_v46 = vmul.f32 %v2661_v44, %v3435_v60 }
 0x3fe   : > { %2540 = vrot.lane.b32.xlu0 %v2534_v59, %s2971_s4 }
 0x40a   : > { %v1183_v43 = vpop.xlane.xlu1 %1182 }
 0x40b   : > { %2662 = vrcp.f32 %v1183_v43 }
 0x415   : > { %v2663_v45 = vpop.eup %2662 }
 0x416   : > { %v1213_v47 = vmul.f32 %v2663_v45, %v2647_v3 }
 0x418   : > { %v1221_v48 = vpack.c.bf16 %v1214_v46, %v1213_v47 }
 0x41a   : > { %2341 = vmatmul.mubr.msk.bf16.vlgmr.msra.gmra.mrb[4].mxu0 %vm1132_vm2, %v1221_v48 }
 0x41b   : > { %2352 = vmatprep.mubr.msk.bf16.mxu0 %vm2970_vm0, %v2969_v1 }
 0x463   : > { %v1189_v49 = vpop.xlane.xlu1 %1188 }
 0x464   : > { %2664 = vrcp.f32 %v1189_v49 }
 0x467   : > { %v1192_v50 = vpop.xlane.xlu0 %1191 }
 0x468   : > { %2666 = vrcp.f32 %v1192_v50 }
 0x46b   : > { %v1195_v51 = vpop.xlane.xlu1 %1194 }
 0x46d   : > { %v1198_v52 = vpop.xlane.xlu0 %1197 }
 0x46e   : > { %2668 = vrcp.f32 %v1198_v52  ;;  %v2665_v53 = vpop.eup %2664 }
 0x46f   : > { %2670 = vrcp.f32 %v1195_v51  ;;  %v1215_v55 = vmul.f32 %v2665_v53, %v2649_v15 }
 0x472   : > { %v2667_v54 = vpop.eup %2666 }
 0x473   : > { %v1216_v56 = vmul.f32 %v2667_v54, %v2651_v20  ;;  %v1201_v59 = vpop.xlane.xlu1 %1200 }
 0x474   : > { %2672 = vrcp.f32 %v1201_v59 }
 0x475   : > { %v1204_v60 = vpop.xlane.xlu0 %1203  ;;  %v1222_v61 = vpack.c.bf16 %v1216_v56, %v1215_v55 }
 0x476   : > { %2674 = vrcp.f32 %v1204_v60 }
 0x477   : > { %v2546_v62 = vpop.permute.xlu1 %2545  ;;  %2347 = vmatmul.mubr.msk.bf16.vlgmr.msra.gmra.mrb[20].mxu1 %vm1132_vm2, %v1222_v61 }
 0x478   : > { %v2669_v63 = vpop.eup %2668  ;;  %v2548_v2 = vunpack.i.h.bf16 %v2546_v62  ;;  %v2547_v3 = vunpack.i.l.bf16 %v2546_v62  ;;  %2358 = vmatprep.mubr.msk.bf16.mxu1 %vm2970_vm0, %v2969_v1 }
 0x479   : > { %v2541_v4 = vpop.permute.xlu0 %2540  ;;  %v2671_v5 = vpop.eup %2670  ;;  %v1218_v58 = vmul.f32 %v2669_v63, %v2655_v36  ;;  %v2603_v36 = vld [vmem:[#allocation8 + $0x38] sm:$0xff]  }
 0x47a   : > { %v942_v6 = vpack.c.bf16 %v2548_v2, %v2547_v3  ;;  %v2543_v7 = vunpack.i.h.bf16 %v2541_v4  ;;  %v2542_v57 = vunpack.i.l.bf16 %v2541_v4  ;;  %v1217_v9 = vmul.f32 %v2671_v5, %v2653_v32  ;;  %v2602_v32 = vld [vmem:[#allocation8 + $0x30] sm:$0xff]   ;;  %v2184_v2 = vld [vmem:[%s3568_s5] ss:$0 sm:$0xff] }
 0x47c   : > { %v941_v8 = vpack.c.bf16 %v2543_v7, %v2542_v57  ;;  %2357 = vmatpush3.bf16.msra.mxu1 %v942_v6  ;;  %v1223_v11 = vpack.c.bf16 %v1218_v58, %v1217_v9  ;;  %v2604_v9 = vld [vmem:[#allocation10] ss:$8 sps:$4 sm:$0xff]  }
 0x47e   : > { %v2673_v10 = vpop.eup %2672  ;;  %2351 = vmatpush3.bf16.msra.mxu0 %v941_v8 }
 0x47f   : > { %2362 = vmatprep.subr.bf16.mxu0 %v2969_v1  ;;  %v1219_v13 = vmul.f32 %v2673_v10, %v2657_v38  ;;  %v2606_v10 = vld [vmem:[#allocation10 + $0x4] ss:$8 sps:$4 sm:$0xff]  }
 0x480   : > { %v2675_v12 = vpop.eup %2674  ;;  %1698 = vmatprep.subr.bf16.mxu1 %v2606_v10 }
 0x481   : > { %v1220_v14 = vmul.f32 %v2675_v12, %v2659_v40  ;;  %2353 = vmatmul.mubr.msk.bf16.vlgmr.msra.gmra.mrb[8].mxu0 %vm1132_vm2, %v1223_v11  ;;  %v2609_v11 = vld [vmem:[#allocation10 + $0x14] ss:$8 sps:$4 sm:$0xff]   ;;  %v2607_v12 = vld [vmem:[#allocation10 + $0x10] ss:$8 sps:$4 sm:$0xff]  }
 0x482   : > { %2378 = vmatprep.mubr.msk.bf16.mxu0 %vm2970_vm0, %v2969_v1  ;;  %2363 = vmatpush3.bf16.msra.mxu0 %v2596_v16 }
 0x483   : > { %v1224_v15 = vpack.c.bf16 %v1220_v14, %v1219_v13  ;;  %2364 = vmatprep.subr.bf16.mxu0 %v2969_v1 }
 0x485   : > { %2359 = vmatmul.mubr.msk.bf16.vlgmr.msra.gmra.mrb[24].mxu1 %vm1132_vm2, %v1224_v15 }
 0x486   : > { %1730 = vmatprep.mubr.bf16.mxu1 %v2968_v0  ;;  %2365 = vmatpush3.bf16.msra.mxu0 %v2597_v17  ;;  %v2600_v0 = vld [vmem:[#allocation8 + $0x20] sm:$0xff]  }
 0x487   : > { %2366 = vmatprep.subr.bf16.mxu0 %v2969_v1  ;;  %1699 = vmatpush1.bf16.msra.mxu1 %v2604_v9 }
 0x488   : > { %1700 = vmatprep.subr.bf16.mxu1 %v2609_v11 }
 0x48a   : > { %2367 = vmatpush3.bf16.msra.mxu0 %v2598_v18 }
 0x48b   : > { %2368 = vmatprep.subr.bf16.mxu0 %v2969_v1  ;;  %1701 = vmatpush1.bf16.msra.mxu1 %v2607_v12 }
 0x48e   : > { %2369 = vmatpush3.bf16.msra.mxu0 %v2599_v25  ;;  %v2618_v25 = vld [vmem:[#allocation10 + $0x44] ss:$8 sps:$4 sm:$0xff]  }
 0x48f   : > { %2370 = vmatprep.subr.bf16.mxu0 %v2969_v1 }
 0x492   : > { %2371 = vmatpush3.bf16.msra.mxu0 %v2600_v0  ;;  %v2616_v0 = vld [vmem:[#allocation10 + $0x40] ss:$8 sps:$4 sm:$0xff]  }
 0x493   : > { %2372 = vmatprep.subr.bf16.mxu0 %v2969_v1 }
 0x496   : > { %2373 = vmatpush3.bf16.msra.mxu0 %v2601_v26  ;;  %v2621_v26 = vld [vmem:[#allocation10 + $0x54] ss:$8 sps:$4 sm:$0xff]  }
 0x497   : > { %2374 = vmatprep.subr.bf16.mxu0 %v2969_v1 }
 0x49a   : > { %2375 = vmatpush3.bf16.msra.mxu0 %v2602_v32  ;;  %v2627_v32 = vld [vmem:[#allocation10 + $0x74] ss:$8 sps:$4 sm:$0xff]  }
 0x49b   : > { %2376 = vmatprep.subr.bf16.mxu0 %v2969_v1 }
 0x49e   : > { %2377 = vmatpush3.bf16.msra.mxu0 %v2603_v36  ;;  %v2629_v36 = vld [vmem:[#allocation11] sm:$0xff]  }
 0x4ed   : > { %v1262_v19 = vpop.f32.mrb[4].mxu0 }
 0x4ee   : > { %v2342_v20 = vpop.f32.mrb[5].mxu0 }
 0x4ef   : > { %v1265_v21 = vpop.f32.mrb[6].mxu0  ;;  %v2610_v20 = vld [vmem:[#allocation10 + $0x20] ss:$8 sps:$4 sm:$0xff]  }
 0x4f0   : > { %v2343_v22 = vpop.f32.mrb[7].mxu0 }
 0x4f1   : > { %v2613_v22 = vld [vmem:[#allocation10 + $0x30] ss:$8 sps:$4 sm:$0xff]  }
 0x54a   : > { %v1306_v27 = vpop.f32.mrb[20].mxu1 }
 0x54b   : > { %v2348_v28 = vpop.f32.mrb[21].mxu1 }
 0x54c   : > { %v1309_v29 = vpop.f32.mrb[22].mxu1  ;;  %v2624_v28 = vld [vmem:[#allocation10 + $0x64] ss:$8 sps:$4 sm:$0xff]  }
 0x54d   : > { %v2549_v34 = vpack.i.bf16 %v1309_v29, %v1306_v27  ;;  %v2349_v35 = vpop.f32.mrb[23].mxu1  ;;  %v2619_v27 = vld [vmem:[#allocation10 + $0x50] ss:$8 sps:$4 sm:$0xff]   ;;  %v2622_v29 = vld [vmem:[#allocation10 + $0x60] ss:$8 sps:$4 sm:$0xff]  }
 0x54e   : > { %v2628_v35 = vld [vmem:[#allocation11 + $0x40] sm:$0xff]  }
 0x54f   : > { %2550 = vrot.lane.b32.xlu1 %v2549_v34, %s2973_s26  ;;  %v2625_v34 = vld [vmem:[#allocation10 + $0x70] ss:$8 sps:$4 sm:$0xff]   ;;  %2272 = vmatprep.subr.bf16.mxu0 %v2628_v35 }
 0x554   : > { %v1350_v37 = vpop.f32.mrb[8].mxu0 }
 0x555   : > { %v2354_v38 = vpop.f32.mrb[9].mxu0 }
 0x556   : > { %v1353_v39 = vpop.f32.mrb[10].mxu0  ;;  %v2631_v38 = vld [vmem:[#allocation11 + $0x8] sm:$0xff]  }
 0x557   : > { %v2554_v40 = vpack.i.bf16 %v1353_v39, %v1350_v37  ;;  %v2355_v41 = vpop.f32.mrb[11].mxu0  ;;  %v2630_v37 = vld [vmem:[#allocation11 + $0x48] sm:$0xff]   ;;  %v2632_v39 = vld [vmem:[#allocation11 + $0x50] sm:$0xff]  }
 0x558   : > { %v1394_v42 = vpop.f32.mrb[24].mxu1  ;;  %v2634_v41 = vld [vmem:[#allocation11 + $0x58] sm:$0xff]  }
 0x559   : > { %2555 = vrot.lane.b32.xlu0 %v2554_v40, %s2971_s4  ;;  %v2360_v43 = vpop.f32.mrb[25].mxu1  ;;  %v2633_v40 = vld [vmem:[#allocation11 + $0x10] sm:$0xff]   ;;  %s3635_s4 = sld [smem:[#allocation32_spill]] }
 0x55a   : > { %v1397_v44 = vpop.f32.mrb[26].mxu1  ;;  %v2636_v43 = vld [vmem:[#allocation11 + $0x60] sm:$0xff]  }
 0x55b   : > { %v2559_v45 = vpack.i.bf16 %v1397_v44, %v1394_v42  ;;  %v2361_v46 = vpop.f32.mrb[27].mxu1  ;;  %v2635_v42 = vld [vmem:[#allocation11 + $0x18] sm:$0xff]   ;;  %v2637_v44 = vld [vmem:[#allocation11 + $0x20] sm:$0xff]  }
 0x55d   : > { %2560 = vrot.lane.b32.xlu1 %v2559_v45, %s2972_s10  ;;  %v2638_v45 = vld [vmem:[#allocation11 + $0x68] sm:$0xff]  }
 0x5c1   : > { %v2551_v47 = vpop.permute.xlu1 %2550 }
 0x5c2   : > { %v2553_v49 = vunpack.i.h.bf16 %v2551_v47  ;;  %v2552_v1 = vunpack.i.l.bf16 %v2551_v47 }
 0x5c4   : > { %v1426_v53 = vsel %vm943_vm1, %v1265_v21, %v2553_v49  ;;  %v1425_v54 = vsel %vm943_vm1, %v1262_v19, %v2552_v1  ;;  %v2612_v19 = vld [vmem:[#allocation10 + $0x24] ss:$8 sps:$4 sm:$0xff]   ;;  %v2615_v21 = vld [vmem:[#allocation10 + $0x34] ss:$8 sps:$4 sm:$0xff]  }
 0x5c5   : > { %1702 = vmatprep.subr.bf16.mxu1 %v2612_v19 }
 0x5c6   : > { %1703 = vmatpush1.bf16.msra.mxu1 %v2610_v20 }
 0x5c7   : > { %1704 = vmatprep.subr.bf16.mxu1 %v2615_v21 }
 0x5ca   : > { %1705 = vmatpush1.bf16.msra.mxu1 %v2613_v22 }
 0x5cb   : > { %v2556_v48 = vpop.permute.xlu0 %2555  ;;  %1706 = vmatprep.subr.bf16.mxu1 %v2618_v25 }
 0x5cc   : > { %v2558_v50 = vunpack.i.h.bf16 %v2556_v48  ;;  %v2557_v51 = vunpack.i.l.bf16 %v2556_v48 }
 0x5ce   : > { %v1428_v59 = vsel %vm1427_vm3, %v1425_v54, %v2557_v51  ;;  %v1429_v60 = vsel %vm1427_vm3, %v1426_v53, %v2558_v50  ;;  %1707 = vmatpush1.bf16.msra.mxu1 %v2616_v0  ;;  %v2193_v53 = vld [vmem:[%s3569_s6] ss:$0 sm:$0xff] }
 0x5cf   : > { %v2561_v52 = vpop.permute.xlu1 %2560  ;;  %1708 = vmatprep.subr.bf16.mxu1 %v2621_v26 }
 0x5d0   : > { %v2563_v55 = vunpack.i.h.bf16 %v2561_v52  ;;  %v2562_v56 = vunpack.i.l.bf16 %v2561_v52 }
 0x5d2   : > { %v1432_v61 = vsel %vm1430_vm4, %v1429_v60, %v2563_v55  ;;  %v1431_v62 = vsel %vm1430_vm4, %v1428_v59, %v2562_v56  ;;  %1709 = vmatpush1.bf16.msra.mxu1 %v2619_v27  ;;  %v2194_v59 = vld [vmem:[%s3631_s20] ss:$0 sm:$0xff]  ;;  %s3637_s20 = sld [smem:[#allocation34_spill]] }
 0x5d3   : > { %v1433_v63 = vpack.c.bf16 %v1432_v61, %v1431_v62  ;;  %1710 = vmatprep.subr.bf16.mxu1 %v2624_v28 }
 0x5d5   : > { %2379 = vmatmul.mubr.bf16.vlgmr.msra.gmra.mrb[12].mxu0 %v1433_v63 }
 0x5d6   : > { %1711 = vmatpush1.bf16.msra.mxu1 %v2622_v29  ;;  %2273 = vmatpush3.bf16.msra.mxu0 %v2629_v36 }
 0x5d7   : > { %1712 = vmatprep.subr.bf16.mxu1 %v2627_v32  ;;  %2274 = vmatprep.subr.bf16.mxu0 %v2630_v37 }
 0x5d8   : > { %s3512_s2 = scalar_lea.hbm %s3637_s20, %s2237_s22 }
 0x5da   : > { %1713 = vmatpush1.bf16.msra.mxu1 %v2625_v34  ;;  %2275 = vmatpush3.bf16.msra.mxu0 %v2631_v38 }
 0x5db   : > { %2276 = vmatprep.subr.bf16.mxu0 %v2632_v39 }
 0x5de   : > { %2277 = vmatpush3.bf16.msra.mxu0 %v2633_v40 }
 0x5df   : > { %2278 = vmatprep.subr.bf16.mxu0 %v2634_v41 }
 0x5e2   : > { %2279 = vmatpush3.bf16.msra.mxu0 %v2635_v42 }
 0x5e3   : > { %2280 = vmatprep.subr.bf16.mxu0 %v2636_v43 }
 0x5e6   : > { %2281 = vmatpush3.bf16.msra.mxu0 %v2637_v44 }
 0x5e7   : > { %2282 = vmatprep.subr.bf16.mxu0 %v2638_v45 }
 0x6a8   : > { %v1539_v3 = vpop.f32.mrb[12].mxu0 }
 0x6a9   : > { %v1540_v4 = vadd.f32 %v2184_v2, %v1539_v3  ;;  %v2380_v5 = vpop.f32.mrb[13].mxu0  ;;  %v2640_v3 = vld [vmem:[#allocation11 + $0x70] sm:$0xff]  }
 0x6aa   : > { %v1542_v6 = vpop.f32.mrb[14].mxu0  ;;  %v2642_v5 = vld [vmem:[#allocation11 + $0x78] sm:$0xff]  }
 0x6ab   : > { %v1543_v7 = vadd.f32 %v2184_v2, %v1542_v6  ;;  %v2381_v57 = vpop.f32.mrb[15].mxu0  ;;  %v1546_v58 = vadd.f32 %v1540_v4, %v3360_v23  ;;  %v2639_v2 = vld [vmem:[#allocation11 + $0x28] sm:$0xff]   ;;  %v2641_v4 = vld [vmem:[#allocation11 + $0x30] sm:$0xff]   ;;  %v2643_v6 = vld [vmem:[#allocation11 + $0x38] sm:$0xff]  }
 0x6ac   : > { %2283 = vmatpush3.bf16.msra.mxu0 %v2639_v2 }
 0x6ad   : > { %1548 = vadd.xlane.f32.xlu0 %v1546_v58  ;;  %v1547_v8 = vadd.f32 %v1543_v7, %v3363_v24  ;;  %2284 = vmatprep.subr.bf16.mxu0 %v2640_v3  ;;  %v1606_v7 = vld [vmem:[%s3632_s0] sm:$0x3]  ;;  %s2856_s0 = scalar_lea.vmem %s3514_s16, 256 }
 0x6ae   : > { %v1611_v57 = vrot.slane %v1606_v7, %v644_v31  ;;  %p2857_p2 = scmp.ne.s32.totalorder %s3514_s16, %s2856_s0  ;;  %p2864_p7 = scmp.lt.s32.totalorder %s2862_s7, %s2856_s0 }
 0x6af   : > { %1550 = vadd.xlane.f32.xlu1 %v1547_v8 }
 0x6b0   : > { %2285 = vmatpush3.bf16.msra.mxu0 %v2641_v4  ;;  %p2858_p8 = pnand %p2857_p2, %p3226_p5  ;;  %p2865_p12 = por %p2864_p7, %p2863_p3 }
 0x6b1   : > { %2286 = vmatprep.subr.bf16.mxu0 %v2642_v5 }
 0x6b2   : > { %p2859_p10 = pneg %p2858_p8 }
 0x6b4   : > { %2287 = vmatpush3.bf16.msra.mxu0 %v2643_v6  ;;  %p2866_p6 = pnand %p2865_p12, %p2859_p10 }
 0x73a   : > { %v1549_v13 = vpop.xlane.xlu0 %1548 }
 0x73b   : > { %v1553_v14 = vmul.f32 0.0078125, %v1549_v13 }
 0x73c   : > { %v1551_v15 = vpop.xlane.xlu1 %1550 }
 0x73d   : > { %v1555_v16 = vsub.f32 %v1546_v58, %v1553_v14  ;;  %v1554_v17 = vmul.f32 0.0078125, %v1551_v15  ;;  %v1615_v58 = vrot.slane %v1606_v7, %v648_v33 }
 0x73f   : > { %v3479_v18 = vsub.f32 %v1547_v8, %v1554_v17  ;;  %v1557_v23 = vmul.f32 %v1555_v16, %v1555_v16 }
 0x741   : > { %1559 = vadd.xlane.f32.xlu0 %v1557_v23  ;;  %v1558_v24 = vmul.f32 %v3479_v18, %v3479_v18 }
 0x745   : > { %1561 = vadd.xlane.f32.xlu0 %v1558_v24 }
 0x7ce   : > { %v1560_v46 = vpop.xlane.xlu0 %1559 }
 0x7cf   : > { %v1563_v47 = vmul.f32 0.0078125, %v1560_v46 }
 0x7d1   : > { %v1565_v48 = vadd.f32 1e-05, %v1563_v47  ;;  %v2228_v47 = vld [vmem:[%s3635_s4] ss:$0 sm:$0xff] }
 0x7d2   : > { %v1562_v49 = vpop.xlane.xlu0 %1561 }
 0x7d3   : > { %2676 = vrsqrt.f32 %v1565_v48  ;;  %v1564_v1 = vmul.f32 0.0078125, %v1562_v49 }
 0x7d5   : > { %v1566_v50 = vadd.f32 1e-05, %v1564_v1  ;;  %v2229_v1 = vld [vmem:[%s3636_s24] ss:$0 sm:$0xff] }
 0x7d7   : > { %2678 = vrsqrt.f32 %v1566_v50 }
 0x7dd   : > { %v2677_v51 = vpop.eup %2676 }
 0x7de   : > { %v1569_v52 = vmul.f32 %v2677_v51, %v1555_v16 }
 0x7e0   : > { %v1578_v56 = vmul.f32 %v2193_v53, %v1569_v52 }
 0x7e1   : > { %v2679_v54 = vpop.eup %2678 }
 0x7e2   : > { %v1570_v55 = vmul.f32 %v2679_v54, %v3479_v18  ;;  %v1587_v61 = vadd.f32 %v2194_v59, %v1578_v56 }
 0x7e4   : > { %v1579_v60 = vmul.f32 %v2193_v53, %v1570_v55 }
 0x7e6   : > { %v1588_v62 = vadd.f32 %v2194_v59, %v1579_v60 }
 0x7e8   : > { %v1589_v63 = vpack.c.bf16 %v1588_v62, %v1587_v61 }
 0x7ea   : > { %1731 = vmatmul.mubr.bf16.vlgmr.msra.gmra.mrb[28].mxu1 %v1589_v63 }
 0x8bd   : > { %v1732_v8 = vpop.f32.mrb[28].mxu1 }
 0x8be   : > { %v1733_v9 = vadd.f32 %v1732_v8, %v1611_v57  ;;  %v1734_v10 = vpop.f32.mrb[29].mxu1 }
 0x8bf   : > { %v1735_v11 = vadd.f32 %v1734_v10, %v1615_v58  ;;  %v1736_v12 = vpop.f32.mrb[30].mxu1 }
 0x8c0   : > { %v1737_v13 = vadd.f32 %v1736_v12, %v1611_v57  ;;  %v1738_v14 = vpop.f32.mrb[31].mxu1  ;;  %v1741_v16 = vmax.f32 %v1733_v9, 0.0 }
 0x8c1   : > { %v1739_v15 = vadd.f32 %v1738_v14, %v1615_v58  ;;  %v1742_v18 = vmax.f32 %v1735_v11, 0.0 }
 0x8c2   : > { %v1743_v17 = vmax.f32 %v1737_v13, 0.0 }
 0x8c3   : > { %v1744_v23 = vmax.f32 %v1739_v15, 0.0 }
 0x8c4   : > { %v1745_v24 = vpack.c.bf16 %v1743_v17, %v1741_v16 }
 0x8c5   : > { %v1746_v19 = vpack.c.bf16 %v1744_v23, %v1742_v18 }
 0x8c7   : > { %1914 = vmatprep.mubr.bf16.mxu0 %v1746_v19 }
 0x8c8   : > { %1915 = vmatmul.mubr.bf16.vlgmr.msra.gmra.mrb[16].mxu0 %v1745_v24 }
 0x99b   : > { %v2288_v31 = vpop.f32.mrb[16].mxu0 }
 0x99c   : > { %v2289_v33 = vpop.f32.mrb[17].mxu0 }
 0x99d   : > { %v2290_v20 = vadd.f32 %v2289_v33, %v2288_v31  ;;  %v2291_v21 = vpop.f32.mrb[18].mxu0 }
 0x99e   : > { %v2292_v22 = vpop.f32.mrb[19].mxu0 }
 0x99f   : > { %v1917_v25 = vadd.f32 %v2290_v20, %v2211_v30  ;;  %v2293_v0 = vadd.f32 %v2292_v22, %v2291_v21 }
 0x9a1   : > { %v1920_v26 = vadd.f32 %v2293_v0, %v2211_v30  ;;  %v1923_v27 = vadd.f32 %v1917_v25, %v1587_v61 }
 0x9a3   : > { %1925 = vadd.xlane.f32.xlu1 %v1923_v27  ;;  %v1924_v28 = vadd.f32 %v1920_v26, %v1588_v62 }
 0x9a5   : > { %1927 = vadd.xlane.f32.xlu0 %v1924_v28 }
 0xa30   : > { %v1926_v29 = vpop.xlane.xlu1 %1925 }
 0xa31   : > { %v1929_v32 = vmul.f32 0.0078125, %v1926_v29 }
 0xa32   : > { %v1928_v34 = vpop.xlane.xlu0 %1927 }
 0xa33   : > { %v1931_v35 = vsub.f32 %v1923_v27, %v1929_v32  ;;  %v1930_v36 = vmul.f32 0.0078125, %v1928_v34 }
 0xa35   : > { %v1932_v37 = vsub.f32 %v1924_v28, %v1930_v36  ;;  %v1933_v38 = vmul.f32 %v1931_v35, %v1931_v35 }
 0xa37   : > { %1935 = vadd.xlane.f32.xlu1 %v1933_v38  ;;  %v1934_v39 = vmul.f32 %v1932_v37, %v1932_v37 }
 0xa39   : > { %1937 = vadd.xlane.f32.xlu0 %v1934_v39 }
 0xac4   : > { %v1936_v40 = vpop.xlane.xlu1 %1935 }
 0xac5   : > { %v1939_v41 = vmul.f32 0.0078125, %v1936_v40 }
 0xac6   : > { %v1938_v42 = vpop.xlane.xlu0 %1937 }
 0xac7   : > { %v1941_v43 = vadd.f32 1e-05, %v1939_v41  ;;  %v1940_v44 = vmul.f32 0.0078125, %v1938_v42 }
 0xac9   : > { %2680 = vrsqrt.f32 %v1941_v43  ;;  %v1942_v45 = vadd.f32 1e-05, %v1940_v44 }
 0xacb   : > { %2682 = vrsqrt.f32 %v1942_v45 }
 0xad3   : > { %v2681_v46 = vpop.eup %2680 }
 0xad4   : > { %v1945_v48 = vmul.f32 %v2681_v46, %v1931_v35 }
 0xad5   : > { %v2683_v49 = vpop.eup %2682 }
 0xad6   : > { %v1954_v50 = vmul.f32 %v2228_v47, %v1945_v48  ;;  %v1946_v51 = vmul.f32 %v2683_v49, %v1932_v37 }
 0xad8   : > { %v1963_v52 = vadd.f32 %v2229_v1, %v1954_v50  ;;  %v1955_v53 = vmul.f32 %v2228_v47, %v1946_v51 }
 0xada   : > { %v1964_v54 = vadd.f32 %v2229_v1, %v1955_v53  ;;  %1965 = vst [vmem:[%s601_s27] sm:$0xff] %v1963_v52 }
 0xadc   : > { %1966 = vst [vmem:[%s601_s27 + $0x8] sm:$0xff] %v1964_v54 }
 0xadd   : > { %2869 = shalt.err (!%p2866_p6)
}
 0xade   : > { %s2870_s23 = scalar_lea.hbm %s3512_s2, 256  ;;  %s2874_s21 = scalar_lea.hbm %s3637_s20, 512 }
 0xadf   : > { %p2871_p11 = scmp.ne.s32.totalorder %s3512_s2, %s2870_s23  ;;  %p2875_p1 = scmp.lt.u32.totalorder %s3512_s2, %s3637_s20 }
 0xae0   : > { %p2876_p13 = scmp.lt.u32.totalorder %s2874_s21, %s2870_s23  ;;  %p2878_p2 = scmp.lt.u32.totalorder %s2870_s23, %s3512_s2 }
 0xae1   : > { %p2872_p9 = pnand %p2871_p11, %p3226_p5 }
 0xae2   : > { %p2877_p4 = por %p2876_p13, %p2875_p1 }
 0xae3   : > { %p2873_p0 = pneg %p2872_p9 }
 0xae4   : > { %p2879_p8 = por %p2878_p2, %p2877_p4 }
 0xae6   : > { %p2880_p10 = pnand %p2879_p8, %p2873_p0 }
 0xae8   : > { %2883 = shalt.err (!%p2880_p10)
}
 0xae9   : > { %s2975_s26 = smov 128   ;;  %s2976_s24 = smov 8  }
 0xaea   : > { %2402 = dma.vmem_to_hbm [thread:$0]  (%p3226_p5), %s3514_s16, 256, %s3512_s2, %s1968_s9, %s2975_s26, %s2975_s26, %s2976_s24  }
 0xaeb PF: > { %s3638_s22 = sld [smem:[#allocation20_spill]]  ;;  %s3639_s27 = sld [smem:[#allocation22_spill]] }
 0xaec   : > { %p3641_p7 = scmp.ge.s32.totalorder %s2954_s18, 2 }
 0xaf1   : > { %s1998_s14 = sand.u32 1, %s3638_s22   ;;  %p3640_p3 = scmp.ne.s32.totalorder %s3639_s27, 0 }
 0xaf2   : > { %s1999_s8 = scalar_lea.sflag [#allocation4], %s1998_s14 }
 0xaf3   : > { %p2425_p12 = pnand %p3641_p7, %p3640_p3 }
 0xaf5   : > { %2929 = dma.done.wait (!%p2425_p12), %s1999_s8, 256  }
 0xaf6   : > { %2931 = vsyncadd (!%p2425_p12), %s1999_s8, 4294967040  ;;  %s35_s18 = sadd.s32 1, %s2954_s18   ;;  %s3642_s13 = sld [smem:[#allocation23_spill]] }
 0xaf7   : > { %p32_p6 = scmp.ge.s32.totalorder %s35_s18, 4   ;;  %s3643_s29 = smov %s2938_s30 }
 0xaf8   : > { %s3644_s30 = smov %s2942_s15  ;;  %s3645_s15 = smov %s3237_s25 }
 0xaf9   : > { %s3646_s16 = smov %s2950_s17  ;;  %34 = sbr.rel (!%p32_p6) target bundleno = 22 (0x16), region = 150 }
 0xafc   : > { %s3647_s17 = smov %s3642_s13 }
 0xb00   :  { %2004 = vsyncpa [#allocation3], 1 }
 0xb01   :  { %2006 = vsyncpa [#allocation3 + $0x1], 1 }
 0xb02   :  { %2007 = vsyncpa [#allocation6], 1 }
 0xb03   :  { %2009 = vsyncpa [#allocation6 + $0x1], 1 }
 0xb04   :  { %2010 = vsyncpa [#allocation9], 1 }
 0xb05   :  { %2011 = vsyncpa [#allocation12], 1 }
 0xb06   :  { %2012 = vsyncpa [#allocation4], 1 }
 0xb07   :  { %2014 = vsyncpa [#allocation4 + $0x1], 1 }

</bundles_post_ra>
